<compile_context>
chip_gen: v6e
topology: v6e:2x2x1
jax: 0.10.0
libtpu: 0.0.40
codegen_flags: <defaults>
</compile_context>

<pallas_src>
import math
import jax
import jax.numpy as jnp
from jax.experimental import pallas as pl
from jax.experimental.pallas import tpu as pltpu

# ---- synthetic hyperparameters (small, TPU-tile friendly) ----
B       = 2                      # batch
NMIC    = 2                      # input microphones
NSPK    = 2                      # output speakers
WIN     = 32                     # analysis / synthesis window length
HOP     = 16                     # frame hop (= WIN // 2)
F       = 256                    # frames per utterance
T       = (F - 1) * HOP + WIN    # 4112 time samples  (= (F+1)*HOP)
D       = 64                     # encoder feature dim
HID     = 64                     # separator hidden dim
ROWS    = B * F                  # 512 frame-rows total
TM      = 256                    # rows per grid step (fills v6e/v7x MXU M)
KIN     = NMIC * WIN             # 64   input feature width
NW      = NSPK * D               # 128  wide (per-speaker) feature width
OUT_PAD = 128                    # lane-dense padded output width (NSPK*WIN=64 -> 128)

# packed weight-slab row offsets
_OFF_WEF = 0            # (KIN, NW)   : [We|We] with analysis window folded
_OFF_WEH = KIN          # (KIN, NW)   : We@W1, zero-padded to NW lanes
_OFF_W2  = 2 * KIN      # (NW,  NW)   : W2, zero-padded rows
_OFF_WD  = 2 * KIN + NW  # (NW, NW)   : block-diagonal decoder, synth window folded
_W_ROWS  = 2 * KIN + 2 * NW          # 384


def esd_kernel(frames_ref, w_ref, b_ref, out_ref):
    """Fused encoder -> separator -> decoder hot path (one 256-row tile).

    frames_ref : (TM, KIN)      bf16  raw frames (analysis window folded into weights)
    w_ref      : (384, 128)     bf16  packed weight slab (Wef | We@W1 | W2 | Wd_blk)
    b_ref      : (4, 128)       f32   packed bias slab   (be_w | bh | b2 | bd_blk)
    out_ref    : (TM, OUT_PAD)  f32   lane-dense padded synthesis frames
    """
    x = frames_ref[...]                                                  # (TM, 64) bf16
    b = b_ref[...]                                                       # (4, 128) f32

    # --- encoder (mask path): 128-lane [feats|feats] straight off the MXU ---
    feats = jnp.dot(x, w_ref[_OFF_WEF:_OFF_WEF + KIN, :],
                    preferred_element_type=jnp.float32) + b[0:1, :]      # (TM, 128) f32

    # --- separator hidden layer, independent of feats (We@W1 pre-folded) ---
    h = jnp.maximum(
        jnp.dot(x, w_ref[_OFF_WEH:_OFF_WEH + KIN, :],
                preferred_element_type=jnp.float32) + b[1:2, :], 0.0)    # (TM, 128) f32

    # --- mask logits + sigmoid (EUP path, f32) ---
    logits = jnp.dot(h.astype(jnp.bfloat16), w_ref[_OFF_W2:_OFF_W2 + NW, :],
                     preferred_element_type=jnp.float32) + b[2:3, :]     # (TM, 128)
    masks = jax.nn.sigmoid(logits)

    # --- decoder: mask, then one block-diagonal matmul; single 128-lane store ---
    masked = masks * feats                                               # full-vreg VPU
    dec = jnp.dot(masked.astype(jnp.bfloat16), w_ref[_OFF_WD:_OFF_WD + NW, :],
                  preferred_element_type=jnp.float32) + b[3:4, :]        # (TM, 128)
    out_ref[...] = dec


def make_params(key):
    ks = jax.random.split(key, 8)
    scale = 0.1
    return {
        "We": jax.random.normal(ks[0], (KIN, D), jnp.float32) * scale,
        "be": jax.random.normal(ks[1], (1, D), jnp.float32) * scale,
        "W1": jax.random.normal(ks[2], (D, HID), jnp.float32) * scale,
        "b1": jax.random.normal(ks[3], (1, HID), jnp.float32) * scale,
        "W2": jax.random.normal(ks[4], (HID, NSPK * D), jnp.float32) * scale,
        "b2": jax.random.normal(ks[5], (1, NSPK * D), jnp.float32) * scale,
        "Wd": jax.random.normal(ks[6], (D, WIN), jnp.float32) * scale,
        "bd": jax.random.normal(ks[7], (1, WIN), jnp.float32) * scale,
    }


def encoder_separator_decoder(mix_audio, window, params):
    """mix_audio: (B, NMIC, T) float32; window: (WIN,) float32 -> (B, NSPK, T)."""
    # ---- glue: framing via half-block streams (HOP == WIN/2): reshape + slice + concat ----
    halves = mix_audio.reshape(B, NMIC, F + 1, HOP)                      # T == (F+1)*HOP
    frames = jnp.concatenate([halves[:, :, :F, :], halves[:, :, 1:, :]], axis=-1)  # (B,NMIC,F,WIN)
    frames = frames.transpose(0, 2, 1, 3).reshape(ROWS, KIN).astype(jnp.bfloat16)

    # ---- one-time weight folding / packing (wrapper side, not per-iteration) ----
    awin = jnp.tile(window, NMIC).astype(jnp.float32)                    # (KIN,)
    swin = window.astype(jnp.float32)                                    # (WIN,)

    We_f = awin[:, None] * params["We"]                                  # (KIN, D) analysis window folded
    Wef_wide = jnp.tile(We_f, (1, NSPK))                                 # (KIN, NW) = [We_f | We_f]
    be_wide  = jnp.tile(params["be"], (1, NSPK))                         # (1, NW)

    Weh = We_f @ params["W1"]                                            # (KIN, HID) fused enc->hidden
    bh  = params["be"] @ params["W1"] + params["b1"]                     # (1, HID)
    Weh_pad = jnp.pad(Weh, ((0, 0), (0, NW - HID)))                      # (KIN, NW)
    bh_pad  = jnp.pad(bh, ((0, 0), (0, NW - HID)))                       # (1, NW)

    W2_pad = jnp.pad(params["W2"], ((0, NW - HID), (0, 0)))              # (NW, NW) zero rows for pad lanes
    b2 = params["b2"]                                                    # (1, NW)

    Wd_win = params["Wd"] * swin[None, :]                                # (D, WIN) synth window folded
    Wd_blk = jnp.zeros((NW, OUT_PAD), jnp.float32)
    for s in range(NSPK):
        Wd_blk = Wd_blk.at[s * D:(s + 1) * D, s * WIN:(s + 1) * WIN].set(Wd_win)
    bd_win = params["bd"] * swin[None, :]                                # (1, WIN)
    bd_blk = jnp.zeros((1, OUT_PAD), jnp.float32)
    bd_blk = bd_blk.at[:, :NSPK * WIN].set(jnp.tile(bd_win, (1, NSPK)))

    w_slab = jnp.concatenate([Wef_wide, Weh_pad, W2_pad, Wd_blk], axis=0).astype(jnp.bfloat16)  # (384, 128)
    b_slab = jnp.concatenate([be_wide, bh_pad, b2, bd_blk], axis=0).astype(jnp.float32)         # (4, 128)

    # ---- pallas_call: 2 parallel row-tiles of 256 rows (both TCs on v7x) ----
    out = pl.pallas_call(
        esd_kernel,
        out_shape=jax.ShapeDtypeStruct((ROWS, OUT_PAD), jnp.float32),
        grid=(ROWS // TM,),
        in_specs=[
            pl.BlockSpec((TM, KIN), lambda i: (i, 0)),
            pl.BlockSpec((_W_ROWS, OUT_PAD), lambda i: (0, 0)),
            pl.BlockSpec((4, OUT_PAD), lambda i: (0, 0)),
        ],
        out_specs=pl.BlockSpec((TM, OUT_PAD), lambda i: (i, 0)),
        compiler_params=pltpu.CompilerParams(dimension_semantics=("parallel",)),
    )(frames, w_slab, b_slab)

    # ---- glue: drop lane padding + overlap-add via half-block pad/add (no scatter) ----
    sep = out[:, :NSPK * WIN].reshape(B, F, NSPK, WIN).transpose(0, 2, 1, 3)  # (B, NSPK, F, WIN)
    first, second = sep[..., :HOP], sep[..., HOP:]
    half_out = (jnp.pad(first, ((0, 0), (0, 0), (0, 1), (0, 0)))
                + jnp.pad(second, ((0, 0), (0, 0), (1, 0), (0, 0))))          # (B, NSPK, F+1, HOP)
    return half_out.reshape(B, NSPK, T)


if __name__ == "__main__":
    key = jax.random.PRNGKey(0)
    k_mix, k_par = jax.random.split(key)

    mix_audio = jax.random.normal(k_mix, (B, NMIC, T), jnp.float32)
    # Hann-like analysis/synthesis window (deterministic).
    n = jnp.arange(WIN, dtype=jnp.float32)
    window = 0.5 - 0.5 * jnp.cos(2.0 * math.pi * n / WIN)

    params = make_params(k_par)

    esd_fn = jax.jit(encoder_separator_decoder)
    sep = esd_fn(mix_audio, window, params)
    sep = jax.block_until_ready(sep)

    assert sep.shape == (B, NSPK, T), sep.shape
    assert sep.dtype == jnp.float32
    assert bool(jnp.all(jnp.isfinite(sep)))
    print("KERNEL_OK")
</pallas_src>

<mosaic_0001>
module attributes {stable_mosaic.version = 11 : i64} {
  func.func @esd_kernel(%arg0: i32, %arg1: memref<256x64xbf16, #tpu.memory_space<vmem>>, %arg2: memref<384x128xbf16, #tpu.memory_space<vmem>>, %arg3: memref<4x128xf32, #tpu.memory_space<vmem>>, %arg4: memref<256x128xf32, #tpu.memory_space<vmem>>) attributes {dimension_semantics = [#tpu.dimension_semantics<parallel>], iteration_bounds = array<i64: 2>, scalar_prefetch = 0 : i64, scratch_operands = 0 : i64, tpu.core_type = #tpu.core_type<tc>, window_params = [{transform_indices = @transform_0, window_bounds = array<i64: 256, 64>}, {pipeline_mode = #tpu.pipeline_mode<synchronous>, transform_indices = @transform_1, window_bounds = array<i64: 384, 128>}, {pipeline_mode = #tpu.pipeline_mode<synchronous>, transform_indices = @transform_2, window_bounds = array<i64: 4, 128>}, {transform_indices = @transform_3, window_bounds = array<i64: 256, 128>}]} {
    %c0 = arith.constant 0 : index
    %c0_0 = arith.constant 0 : index
    %0 = vector.load %arg1[%c0, %c0_0] : memref<256x64xbf16, #tpu.memory_space<vmem>>, vector<256x64xbf16>
    %c0_1 = arith.constant 0 : index
    %c0_2 = arith.constant 0 : index
    %1 = vector.load %arg3[%c0_1, %c0_2] : memref<4x128xf32, #tpu.memory_space<vmem>>, vector<4x128xf32>
    %c0_3 = arith.constant 0 : index
    %c0_4 = arith.constant 0 : index
    %2 = vector.load %arg2[%c0_3, %c0_4] : memref<384x128xbf16, #tpu.memory_space<vmem>>, vector<64x128xbf16>
    %cst = arith.constant dense<0.000000e+00> : vector<256x128xf32>
    %3 = tpu.matmul %0, %2, %cst {dimension_numbers = #tpu.dot_dimension_numbers<[1], [0], [0], [1], [0, 0, 1, 1], [], []>} : vector<256x64xbf16>, vector<64x128xbf16>, vector<256x128xf32> -> vector<256x128xf32>
    %4 = vector.extract_strided_slice %1 {offsets = [0, 0], sizes = [1, 128], strides = [1, 1]} : vector<4x128xf32> to vector<1x128xf32>
    %5 = vector.broadcast %4 : vector<1x128xf32> to vector<256x128xf32>
    %6 = arith.addf %3, %5 : vector<256x128xf32>
    %c64 = arith.constant 64 : index
    %c0_5 = arith.constant 0 : index
    %7 = vector.load %arg2[%c64, %c0_5] : memref<384x128xbf16, #tpu.memory_space<vmem>>, vector<64x128xbf16>
    %cst_6 = arith.constant dense<0.000000e+00> : vector<256x128xf32>
    %8 = tpu.matmul %0, %7, %cst_6 {dimension_numbers = #tpu.dot_dimension_numbers<[1], [0], [0], [1], [0, 0, 1, 1], [], []>} : vector<256x64xbf16>, vector<64x128xbf16>, vector<256x128xf32> -> vector<256x128xf32>
    %9 = vector.extract_strided_slice %1 {offsets = [1, 0], sizes = [1, 128], strides = [1, 1]} : vector<4x128xf32> to vector<1x128xf32>
    %10 = vector.broadcast %9 : vector<1x128xf32> to vector<256x128xf32>
    %11 = arith.addf %8, %10 : vector<256x128xf32>
    %cst_7 = arith.constant 0.000000e+00 : f32
    %12 = vector.broadcast %cst_7 : f32 to vector<256x128xf32>
    %13 = arith.maximumf %11, %12 : vector<256x128xf32>
    %14 = arith.truncf %13 : vector<256x128xf32> to vector<256x128xbf16>
    %c128 = arith.constant 128 : index
    %c0_8 = arith.constant 0 : index
    %15 = vector.load %arg2[%c128, %c0_8] : memref<384x128xbf16, #tpu.memory_space<vmem>>, vector<128x128xbf16>
    %cst_9 = arith.constant dense<0.000000e+00> : vector<256x128xf32>
    %16 = tpu.matmul %14, %15, %cst_9 {dimension_numbers = #tpu.dot_dimension_numbers<[1], [0], [0], [1], [0, 0, 1, 1], [], []>} : vector<256x128xbf16>, vector<128x128xbf16>, vector<256x128xf32> -> vector<256x128xf32>
    %17 = vector.extract_strided_slice %1 {offsets = [2, 0], sizes = [1, 128], strides = [1, 1]} : vector<4x128xf32> to vector<1x128xf32>
    %18 = vector.broadcast %17 : vector<1x128xf32> to vector<256x128xf32>
    %19 = arith.addf %16, %18 : vector<256x128xf32>
    %20 = arith.negf %19 : vector<256x128xf32>
    %21 = math.exp %20 : vector<256x128xf32>
    %cst_10 = arith.constant 1.000000e+00 : f32
    %22 = vector.broadcast %cst_10 : f32 to vector<256x128xf32>
    %23 = arith.addf %22, %21 : vector<256x128xf32>
    %24 = arith.divf %22, %23 : vector<256x128xf32>
    %25 = arith.mulf %24, %6 : vector<256x128xf32>
    %26 = arith.truncf %25 : vector<256x128xf32> to vector<256x128xbf16>
    %c256 = arith.constant 256 : index
    %c0_11 = arith.constant 0 : index
    %27 = vector.load %arg2[%c256, %c0_11] : memref<384x128xbf16, #tpu.memory_space<vmem>>, vector<128x128xbf16>
    %cst_12 = arith.constant dense<0.000000e+00> : vector<256x128xf32>
    %28 = tpu.matmul %26, %27, %cst_12 {dimension_numbers = #tpu.dot_dimension_numbers<[1], [0], [0], [1], [0, 0, 1, 1], [], []>} : vector<256x128xbf16>, vector<128x128xbf16>, vector<256x128xf32> -> vector<256x128xf32>
    %29 = vector.extract_strided_slice %1 {offsets = [3, 0], sizes = [1, 128], strides = [1, 1]} : vector<4x128xf32> to vector<1x128xf32>
    %30 = vector.broadcast %29 : vector<1x128xf32> to vector<256x128xf32>
    %31 = arith.addf %28, %30 : vector<256x128xf32>
    %c0_13 = arith.constant 0 : index
    %c0_14 = arith.constant 0 : index
    %32 = vector.load %arg4[%c0_13, %c0_14] : memref<256x128xf32, #tpu.memory_space<vmem>>, vector<256x128xf32>
    tpu.vector_store %arg4[%c0_13, %c0_14], %31 {strides = array<i32>} : memref<256x128xf32, #tpu.memory_space<vmem>>, vector<256x128xf32>,
    return
  }
  func.func @transform_0(%arg0: i32) -> (i32, i32) {
    %c0_i32 = arith.constant 0 : i32
    %c0_i32_0 = arith.constant 0 : i32
    return %arg0, %c0_i32 : i32, i32
  }
  func.func @transform_1(%arg0: i32) -> (i32, i32) {
    %c0_i32 = arith.constant 0 : i32
    %c0_i32_0 = arith.constant 0 : i32
    %c0_i32_1 = arith.constant 0 : i32
    return %c0_i32, %c0_i32_0 : i32, i32
  }
  func.func @transform_2(%arg0: i32) -> (i32, i32) {
    %c0_i32 = arith.constant 0 : i32
    %c0_i32_0 = arith.constant 0 : i32
    %c0_i32_1 = arith.constant 0 : i32
    return %c0_i32, %c0_i32_0 : i32, i32
  }
  func.func @transform_3(%arg0: i32) -> (i32, i32) {
    %c0_i32 = arith.constant 0 : i32
    %c0_i32_0 = arith.constant 0 : i32
    return %arg0, %c0_i32 : i32, i32
  }
}

</mosaic_0001>

<bundles_post_ra>
// kernel: tile.23
= control target key start
LH: loop header
LB: loop body
LE: loop exit
PB: predicated region body
PF: predicated region fallthrough
CT: control target
= control target key end

     0   :  { %s22_s0 = inlined_call_operand.vmem [shape: f32[32], index: 0, kind: input, shape index: {}]   ;;  %s23_s1 = inlined_call_operand.vmem [shape: f32[2,32], index: 1, kind: output, shape index: {}]  }
   0x1   :  { %v4_v0 = vld [vmem:[%s22_s0] ss:$0 sm:$0xff] }
   0x2   :  { %5 = vst [vmem:[%s23_s1] sm:$0x3] %v4_v0 }

// kernel: mul.10
= control target key start
LH: loop header
LB: loop body
LE: loop exit
PB: predicated region body
PF: predicated region fallthrough
CT: control target
= control target key end

     0   :  { %vm8_vm0 = vcmask 261120   ;;  %vm14_vm1 = vcmask 523520   ;;  %s42_s0 = inlined_call_operand.vmem [shape: f32[2,32], index: 0, kind: input, shape index: {}]   ;;  %s43_s1 = inlined_call_operand.vmem [shape: f32[64], index: 1, kind: output, shape index: {}]  }
   0x1   :  { %v5_v0 = vld [vmem:[%s42_s0] sm:$0x3]  ;;  %s25_s0 = smov 32  }
   0x2   :  { %6 = vst [vmem:[#allocation1] sm:$0x3] %v5_v0 }
   0x9   :  { %v11_v1 = vld [vmem:[#allocation1 + $0x1] sm:$0x1]   ;;  %v7_v2 = vld [vmem:[#allocation1] sm:$0x1]  }
   0xa   :  { %12 = vrot.lane.b32.xlu0 %v11_v1, %s25_s0  ;;  %9 = vst.msk [vmem:[#allocation0] sm:$0x1] %vm8_vm0, %v7_v2  }
  0x7c   :  { %v13_v3 = vpop.permute.xlu0 %12  }
  0x7d   :  { %15 = vst.msk [vmem:[#allocation0] sm:$0x1] %vm14_vm1, %v13_v3  }
  0x84   :  { %v20_v4 = vld [vmem:[#allocation0] sm:$0x1] }
  0x85   :  { %23 = vst [vmem:[%s43_s1] sm:$0x1] %v20_v4 }

// kernel: tile.0
= control target key start
LH: loop header
LB: loop body
LE: loop exit
PB: predicated region body
PF: predicated region fallthrough
CT: control target
= control target key end

     0   :  { %vm1028_vm0 = vcmask 1047556   ;;  %s1429_s7 = smov 64   ;;  %vm1030_vm1 = vcmask 523264   ;;  %vm1103_vm2 = vcmask 1048064   ;;  %s1680_s0 = inlined_call_operand.vmem [shape: bf16[64,2,64], index: 0, kind: input, shape index: {}]   ;;  %s1681_s1 = inlined_call_operand.vmem [shape: bf16[64,128], index: 1, kind: output, shape index: {}]  }
   0x1   :  { %v1339_v0 = vld [vmem:[%s1680_s0 + $0x27] sm:$0x1]  ;;  %v1340_v1 = vld [vmem:[%s1680_s0 + $0x26] sm:$0x1]  ;;  %v1341_v2 = vld [vmem:[%s1680_s0 + $0x25] sm:$0x1] }
   0x2   :  { %v402_v3 = vunpack.c.l.bf16 %v1339_v0  ;;  %v418_v4 = vunpack.c.l.bf16 %v1340_v1  ;;  %v434_v5 = vunpack.c.l.bf16 %v1341_v2  ;;  %v1342_v6 = vld [vmem:[%s1680_s0 + $0x24] sm:$0x1]  ;;  %v1343_v7 = vld [vmem:[%s1680_s0 + $0x23] sm:$0x1]  ;;  %v1344_v8 = vld [vmem:[%s1680_s0 + $0x22] sm:$0x1] }
   0x3   :  { %v450_v9 = vunpack.c.l.bf16 %v1342_v6  ;;  %v466_v10 = vunpack.c.l.bf16 %v1343_v7  ;;  %v482_v11 = vunpack.c.l.bf16 %v1344_v8  ;;  %v1345_v12 = vld [vmem:[%s1680_s0 + $0x21] sm:$0x1]  ;;  %v1346_v13 = vld [vmem:[%s1680_s0 + $0x20] sm:$0x1]  ;;  %v1371_v14 = vld [vmem:[%s1680_s0 + $0x7] sm:$0x1] }
   0x4   :  { %405 = vst [vmem:[#allocation1 + $0x138] sm:$0x3] %v402_v3  ;;  %421 = vst [vmem:[#allocation1 + $0x130] sm:$0x3] %v418_v4  ;;  %v498_v15 = vunpack.c.l.bf16 %v1345_v12  ;;  %v514_v16 = vunpack.c.l.bf16 %v1346_v13  ;;  %v914_v17 = vunpack.c.l.bf16 %v1371_v14  ;;  %v1372_v18 = vld [vmem:[%s1680_s0 + $0x6] sm:$0x1] }
   0x5   :  { %437 = vst [vmem:[#allocation1 + $0x128] sm:$0x3] %v434_v5  ;;  %v1373_v19 = vld [vmem:[%s1680_s0 + $0x5] sm:$0x1]  ;;  %v1374_v20 = vld [vmem:[%s1680_s0 + $0x4] sm:$0x1]  ;;  %v930_v21 = vunpack.c.l.bf16 %v1372_v18 }
   0x6   :  { %453 = vst [vmem:[#allocation1 + $0x120] sm:$0x3] %v450_v9  ;;  %469 = vst [vmem:[#allocation1 + $0x118] sm:$0x3] %v466_v10  ;;  %v946_v22 = vunpack.c.l.bf16 %v1373_v19  ;;  %v962_v23 = vunpack.c.l.bf16 %v1374_v20  ;;  %v1375_v24 = vld [vmem:[%s1680_s0 + $0x3] sm:$0x1] }
   0x7   :  { %485 = vst [vmem:[#allocation1 + $0x110] sm:$0x3] %v482_v11  ;;  %v1376_v25 = vld [vmem:[%s1680_s0 + $0x2] sm:$0x1]  ;;  %v1377_v26 = vld [vmem:[%s1680_s0 + $0x1] sm:$0x1]  ;;  %v978_v27 = vunpack.c.l.bf16 %v1375_v24 }
   0x8   :  { %501 = vst [vmem:[#allocation1 + $0x108] sm:$0x3] %v498_v15  ;;  %517 = vst [vmem:[#allocation1 + $0x100] sm:$0x3] %v514_v16  ;;  %v994_v28 = vunpack.c.l.bf16 %v1376_v25  ;;  %v1009_v29 = vunpack.c.l.bf16 %v1377_v26  ;;  %v1022_v30 = vld [vmem:[%s1680_s0] sm:$0x1] }
   0x9   :  { %917 = vst [vmem:[#allocation1 + $0x38] sm:$0x3] %v914_v17  ;;  %v1323_v31 = vld [vmem:[%s1680_s0 + $0x37] sm:$0x1]  ;;  %933 = vst [vmem:[#allocation1 + $0x30] sm:$0x3] %v930_v21  ;;  %v1023_v32 = vunpack.c.l.bf16 %v1022_v30 }
   0xa   :  { %949 = vst [vmem:[#allocation1 + $0x28] sm:$0x3] %v946_v22  ;;  %965 = vst [vmem:[#allocation1 + $0x20] sm:$0x3] %v962_v23  ;;  %v146_v33 = vunpack.c.l.bf16 %v1323_v31  ;;  %v1324_v34 = vld [vmem:[%s1680_s0 + $0x36] sm:$0x1] }
   0xb   :  { %v1325_v35 = vld [vmem:[%s1680_s0 + $0x35] sm:$0x1]  ;;  %v1326_v36 = vld [vmem:[%s1680_s0 + $0x34] sm:$0x1]  ;;  %981 = vst [vmem:[#allocation1 + $0x18] sm:$0x3] %v978_v27  ;;  %v162_v37 = vunpack.c.l.bf16 %v1324_v34 }
   0xc   :  { %997 = vst [vmem:[#allocation1 + $0x10] sm:$0x3] %v994_v28  ;;  %1012 = vst [vmem:[#allocation1 + $0x8] sm:$0x3] %v1009_v29  ;;  %v178_v38 = vunpack.c.l.bf16 %v1325_v35  ;;  %v194_v39 = vunpack.c.l.bf16 %v1326_v36  ;;  %v1327_v40 = vld [vmem:[%s1680_s0 + $0x33] sm:$0x1] }
   0xd   :  { %v1328_v41 = vld [vmem:[%s1680_s0 + $0x32] sm:$0x1]  ;;  %v1329_v42 = vld [vmem:[%s1680_s0 + $0x31] sm:$0x1]  ;;  %1025 = vst [vmem:[#allocation1] sm:$0x3] %v1023_v32  ;;  %v210_v43 = vunpack.c.l.bf16 %v1327_v40 }
   0xe   :  { %149 = vst [vmem:[#allocation1 + $0x1b8] sm:$0x3] %v146_v33  ;;  %v226_v44 = vunpack.c.l.bf16 %v1328_v41  ;;  %v242_v45 = vunpack.c.l.bf16 %v1329_v42  ;;  %v1330_v46 = vld [vmem:[%s1680_s0 + $0x30] sm:$0x1]  ;;  %v1355_v47 = vld [vmem:[%s1680_s0 + $0x17] sm:$0x1] }
   0xf   :  { %v1356_v48 = vld [vmem:[%s1680_s0 + $0x16] sm:$0x1]  ;;  %165 = vst [vmem:[#allocation1 + $0x1b0] sm:$0x3] %v162_v37  ;;  %181 = vst [vmem:[#allocation1 + $0x1a8] sm:$0x3] %v178_v38  ;;  %v258_v49 = vunpack.c.l.bf16 %v1330_v46  ;;  %v658_v50 = vunpack.c.l.bf16 %v1355_v47 }
  0x10   :  { %197 = vst [vmem:[#allocation1 + $0x1a0] sm:$0x3] %v194_v39  ;;  %v674_v51 = vunpack.c.l.bf16 %v1356_v48  ;;  %v1357_v52 = vld [vmem:[%s1680_s0 + $0x15] sm:$0x1]  ;;  %v1358_v53 = vld [vmem:[%s1680_s0 + $0x14] sm:$0x1] }
  0x11   :  { %v1359_v54 = vld [vmem:[%s1680_s0 + $0x13] sm:$0x1]  ;;  %213 = vst [vmem:[#allocation1 + $0x198] sm:$0x3] %v210_v43  ;;  %229 = vst [vmem:[#allocation1 + $0x190] sm:$0x3] %v226_v44  ;;  %v690_v55 = vunpack.c.l.bf16 %v1357_v52  ;;  %v706_v56 = vunpack.c.l.bf16 %v1358_v53 }
  0x12   :  { %245 = vst [vmem:[#allocation1 + $0x188] sm:$0x3] %v242_v45  ;;  %v722_v57 = vunpack.c.l.bf16 %v1359_v54  ;;  %v1360_v58 = vld [vmem:[%s1680_s0 + $0x12] sm:$0x1]  ;;  %v1361_v59 = vld [vmem:[%s1680_s0 + $0x11] sm:$0x1] }
  0x13   :  { %v1362_v60 = vld [vmem:[%s1680_s0 + $0x10] sm:$0x1]  ;;  %v1108_v61 = vld [vmem:[#allocation1 + $0x101] ss:$8 sm:$0xf0]   ;;  %v738_v62 = vunpack.c.l.bf16 %v1360_v58  ;;  %v754_v63 = vunpack.c.l.bf16 %v1361_v59 }
  0x14   :  { %261 = vst [vmem:[#allocation1 + $0x180] sm:$0x3] %v258_v49  ;;  %661 = vst [vmem:[#allocation1 + $0xb8] sm:$0x3] %v658_v50  ;;  %v770_v0 = vunpack.c.l.bf16 %v1362_v60  ;;  %v1331_v1 = vld [vmem:[%s1680_s0 + $0x2f] sm:$0x1] }
  0x15   :  { %677 = vst [vmem:[#allocation1 + $0xb0] sm:$0x3] %v674_v51  ;;  %v1106_v2 = vld [vmem:[#allocation1 + $0x101] ss:$8 sm:$0xf]   ;;  %v274_v3 = vunpack.c.l.bf16 %v1331_v1 }
  0x16   :  { %693 = vst [vmem:[#allocation1 + $0xa8] sm:$0x3] %v690_v55  ;;  %709 = vst [vmem:[#allocation1 + $0xa0] sm:$0x3] %v706_v56  ;;  %v1332_v4 = vld [vmem:[%s1680_s0 + $0x2e] sm:$0x1]  ;;  %v1110_v8 = vsel %vm1028_vm0, %v1108_v61, %v1106_v2 }
  0x17   :  { %725 = vst [vmem:[#allocation1 + $0x98] sm:$0x3] %v722_v57  ;;  %v1098_v5 = vld [vmem:[#allocation1 + $0x1] ss:$8 sm:$0xf0]   ;;  %v290_v6 = vunpack.c.l.bf16 %v1332_v4 }
  0x18   :  { %741 = vst [vmem:[#allocation1 + $0x90] sm:$0x3] %v738_v62  ;;  %757 = vst [vmem:[#allocation1 + $0x88] sm:$0x3] %v754_v63  ;;  %v1333_v7 = vld [vmem:[%s1680_s0 + $0x2d] sm:$0x1] }
  0x19   :  { %773 = vst [vmem:[#allocation1 + $0x80] sm:$0x3] %v770_v0  ;;  %277 = vst [vmem:[#allocation1 + $0x178] sm:$0x3] %v274_v3  ;;  %v306_v9 = vunpack.c.l.bf16 %v1333_v7  ;;  %v1334_v10 = vld [vmem:[%s1680_s0 + $0x2c] sm:$0x1] }
  0x1a   :  { %v1335_v11 = vld [vmem:[%s1680_s0 + $0x2b] sm:$0x1]  ;;  %v1336_v12 = vld [vmem:[%s1680_s0 + $0x2a] sm:$0x1]  ;;  %293 = vst [vmem:[#allocation1 + $0x170] sm:$0x3] %v290_v6  ;;  %v322_v14 = vunpack.c.l.bf16 %v1334_v10 }
  0x1b   :  { %v1096_v13 = vld [vmem:[#allocation1 + $0x1] ss:$8 sm:$0xf]   ;;  %v338_v15 = vunpack.c.l.bf16 %v1335_v11  ;;  %v354_v16 = vunpack.c.l.bf16 %v1336_v12  ;;  %309 = vst [vmem:[#allocation1 + $0x168] sm:$0x3] %v306_v9 }
  0x1c   :  { %v1337_v17 = vld [vmem:[%s1680_s0 + $0x29] sm:$0x1]  ;;  %v1100_v18 = vsel %vm1028_vm0, %v1098_v5, %v1096_v13  ;;  %v1338_v21 = vld [vmem:[%s1680_s0 + $0x28] sm:$0x1]  ;;  %325 = vst [vmem:[#allocation1 + $0x160] sm:$0x3] %v322_v14 }
  0x1d   :  { %v1152_v19 = vld [vmem:[#allocation1 + $0x181] ss:$8 sm:$0xf0]   ;;  %v370_v20 = vunpack.c.l.bf16 %v1337_v17  ;;  %v1409_v22 = vpack.i.bf16 %v1110_v8, %v1100_v18  ;;  %341 = vst [vmem:[#allocation1 + $0x158] sm:$0x3] %v338_v15  ;;  %v386_v23 = vunpack.c.l.bf16 %v1338_v21 }
  0x1e   :  { %357 = vst [vmem:[#allocation1 + $0x150] sm:$0x3] %v354_v16  ;;  %v1363_v24 = vld [vmem:[%s1680_s0 + $0xf] sm:$0x1]  ;;  %v1364_v25 = vld [vmem:[%s1680_s0 + $0xe] sm:$0x1] }
  0x1f   :  { %v1365_v26 = vld [vmem:[%s1680_s0 + $0xd] sm:$0x1]  ;;  %v1150_v27 = vld [vmem:[#allocation1 + $0x181] ss:$8 sm:$0xf]   ;;  %v786_v28 = vunpack.c.l.bf16 %v1363_v24  ;;  %v802_v29 = vunpack.c.l.bf16 %v1364_v25  ;;  %1410 = vrot.lane.b32.xlu0 %v1409_v22, %s1429_s7 }
  0x20   :  { %373 = vst [vmem:[#allocation1 + $0x148] sm:$0x3] %v370_v20  ;;  %v818_v30 = vunpack.c.l.bf16 %v1365_v26  ;;  %v1366_v31 = vld [vmem:[%s1680_s0 + $0xc] sm:$0x1]  ;;  %v1154_v33 = vsel %vm1028_vm0, %v1152_v19, %v1150_v27  ;;  %389 = vst [vmem:[#allocation1 + $0x140] sm:$0x3] %v386_v23 }
  0x21   :  { %v1141_v32 = vld [vmem:[#allocation1 + $0x81] ss:$8 sm:$0xf0]   ;;  %v834_v34 = vunpack.c.l.bf16 %v1366_v31  ;;  %v1367_v35 = vld [vmem:[%s1680_s0 + $0xb] sm:$0x1] }
  0x22   :  { %v1139_v36 = vld [vmem:[#allocation1 + $0x81] ss:$8 sm:$0xf]   ;;  %789 = vst [vmem:[#allocation1 + $0x78] sm:$0x3] %v786_v28  ;;  %v850_v37 = vunpack.c.l.bf16 %v1367_v35 }
  0x23   :  { %805 = vst [vmem:[#allocation1 + $0x70] sm:$0x3] %v802_v29  ;;  %821 = vst [vmem:[#allocation1 + $0x68] sm:$0x3] %v818_v30  ;;  %v1368_v38 = vld [vmem:[%s1680_s0 + $0xa] sm:$0x1]  ;;  %v1143_v39 = vsel %vm1028_vm0, %v1141_v32, %v1139_v36 }
  0x24   :  { %837 = vst [vmem:[#allocation1 + $0x60] sm:$0x3] %v834_v34  ;;  %v866_v40 = vunpack.c.l.bf16 %v1368_v38  ;;  %v1369_v41 = vld [vmem:[%s1680_s0 + $0x9] sm:$0x1]  ;;  %v1370_v42 = vld [vmem:[%s1680_s0 + $0x8] sm:$0x1]  ;;  %v1419_v44 = vpack.i.bf16 %v1154_v33, %v1143_v39 }
  0x25   :  { %v1315_v43 = vld [vmem:[%s1680_s0 + $0x3f] sm:$0x1]  ;;  %853 = vst [vmem:[#allocation1 + $0x58] sm:$0x3] %v850_v37  ;;  %v882_v45 = vunpack.c.l.bf16 %v1369_v41  ;;  %v898_v46 = vunpack.c.l.bf16 %v1370_v42  ;;  %v1316_v48 = vld [vmem:[%s1680_s0 + $0x3e] sm:$0x1] }
  0x26   :  { %v18_v47 = vunpack.c.l.bf16 %v1315_v43  ;;  %v1317_v49 = vld [vmem:[%s1680_s0 + $0x3d] sm:$0x1]  ;;  %v1318_v50 = vld [vmem:[%s1680_s0 + $0x3c] sm:$0x1]  ;;  %869 = vst [vmem:[#allocation1 + $0x50] sm:$0x3] %v866_v40  ;;  %v34_v51 = vunpack.c.l.bf16 %v1316_v48  ;;  %1420 = vrot.lane.b32.xlu1 %v1419_v44, %s1429_s7 }
  0x27   :  { %v50_v52 = vunpack.c.l.bf16 %v1317_v49  ;;  %v66_v53 = vunpack.c.l.bf16 %v1318_v50  ;;  %v1319_v54 = vld [vmem:[%s1680_s0 + $0x3b] sm:$0x1]  ;;  %v1320_v55 = vld [vmem:[%s1680_s0 + $0x3a] sm:$0x1]  ;;  %v1321_v56 = vld [vmem:[%s1680_s0 + $0x39] sm:$0x1] }
  0x28   :  { %885 = vst [vmem:[#allocation1 + $0x48] sm:$0x3] %v882_v45  ;;  %901 = vst [vmem:[#allocation1 + $0x40] sm:$0x3] %v898_v46  ;;  %v82_v57 = vunpack.c.l.bf16 %v1319_v54  ;;  %v98_v58 = vunpack.c.l.bf16 %v1320_v55  ;;  %v114_v59 = vunpack.c.l.bf16 %v1321_v56  ;;  %v1322_v60 = vld [vmem:[%s1680_s0 + $0x38] sm:$0x1] }
  0x29   :  { %21 = vst [vmem:[#allocation1 + $0x1f8] sm:$0x3] %v18_v47  ;;  %v1130_v61 = vld [vmem:[#allocation1 + $0x141] ss:$8 sm:$0xf0]   ;;  %v130_v62 = vunpack.c.l.bf16 %v1322_v60 }
  0x2a   :  { %37 = vst [vmem:[#allocation1 + $0x1f0] sm:$0x3] %v34_v51  ;;  %53 = vst [vmem:[#allocation1 + $0x1e8] sm:$0x3] %v50_v52  ;;  %v1347_v63 = vld [vmem:[%s1680_s0 + $0x1f] sm:$0x1] }
  0x2b   :  { %69 = vst [vmem:[#allocation1 + $0x1e0] sm:$0x3] %v66_v53  ;;  %v1348_v0 = vld [vmem:[%s1680_s0 + $0x1e] sm:$0x1]  ;;  %v1349_v1 = vld [vmem:[%s1680_s0 + $0x1d] sm:$0x1]  ;;  %v530_v3 = vunpack.c.l.bf16 %v1347_v63 }
  0x2c   :  { %v1128_v2 = vld [vmem:[#allocation1 + $0x141] ss:$8 sm:$0xf]   ;;  %85 = vst [vmem:[#allocation1 + $0x1d8] sm:$0x3] %v82_v57  ;;  %v546_v4 = vunpack.c.l.bf16 %v1348_v0  ;;  %v562_v5 = vunpack.c.l.bf16 %v1349_v1 }
  0x2d   :  { %101 = vst [vmem:[#allocation1 + $0x1d0] sm:$0x3] %v98_v58  ;;  %117 = vst [vmem:[#allocation1 + $0x1c8] sm:$0x3] %v114_v59  ;;  %v1350_v6 = vld [vmem:[%s1680_s0 + $0x1c] sm:$0x1]  ;;  %v1132_v19 = vsel %vm1028_vm0, %v1130_v61, %v1128_v2 }
  0x2e   :  { %133 = vst [vmem:[#allocation1 + $0x1c0] sm:$0x3] %v130_v62  ;;  %v578_v7 = vunpack.c.l.bf16 %v1350_v6  ;;  %v1351_v8 = vld [vmem:[%s1680_s0 + $0x1b] sm:$0x1]  ;;  %v1352_v9 = vld [vmem:[%s1680_s0 + $0x1a] sm:$0x1] }
  0x2f   :  { %v1353_v10 = vld [vmem:[%s1680_s0 + $0x19] sm:$0x1]  ;;  %533 = vst [vmem:[#allocation1 + $0xf8] sm:$0x3] %v530_v3  ;;  %549 = vst [vmem:[#allocation1 + $0xf0] sm:$0x3] %v546_v4  ;;  %v594_v12 = vunpack.c.l.bf16 %v1351_v8  ;;  %v610_v13 = vunpack.c.l.bf16 %v1352_v9 }
  0x30   :  { %v1119_v11 = vld [vmem:[#allocation1 + $0x41] ss:$8 sm:$0xf0]   ;;  %565 = vst [vmem:[#allocation1 + $0xe8] sm:$0x3] %v562_v5  ;;  %v626_v14 = vunpack.c.l.bf16 %v1353_v10 }
  0x31   :  { %v1354_v15 = vld [vmem:[%s1680_s0 + $0x18] sm:$0x1]  ;;  %581 = vst [vmem:[#allocation1 + $0xe0] sm:$0x3] %v578_v7  ;;  %597 = vst [vmem:[#allocation1 + $0xd8] sm:$0x3] %v594_v12 }
  0x32   :  { %v642_v16 = vunpack.c.l.bf16 %v1354_v15  ;;  %v1026_v17 = vld [vmem:[#allocation1] ss:$8 sm:$0xf]   ;;  %613 = vst [vmem:[#allocation1 + $0xd0] sm:$0x3] %v610_v13 }
  0x33   :  { %v1027_v18 = vld [vmem:[#allocation1] ss:$8 sm:$0xf0]   ;;  %629 = vst [vmem:[#allocation1 + $0xc8] sm:$0x3] %v626_v14 }
  0x34   :  { %v1029_v20 = vsel %vm1028_vm0, %v1027_v18, %v1026_v17  ;;  %v1060_v21 = vld [vmem:[#allocation1 + $0x100] ss:$8 sm:$0xf]   ;;  %v1117_v23 = vld [vmem:[#allocation1 + $0x41] ss:$8 sm:$0xf]  }
  0x35   :  { %v1062_v22 = vld [vmem:[#allocation1 + $0x100] ss:$8 sm:$0xf0]   ;;  %645 = vst [vmem:[#allocation1 + $0xc0] sm:$0x3] %v642_v16  ;;  %1031 = vst.msk [vmem:[#allocation0] sm:$0xff] %vm1030_vm1, %v1029_v20   ;;  %v1121_v26 = vsel %vm1028_vm0, %v1119_v11, %v1117_v23 }
  0x36   :  { %v1064_v24 = vsel %vm1028_vm0, %v1062_v22, %v1060_v21  ;;  %v1042_v25 = vld [vmem:[#allocation1 + $0x80] ss:$8 sm:$0xf]   ;;  %v1174_v27 = vld [vmem:[#allocation1 + $0x1c1] ss:$8 sm:$0xf0]   ;;  %v1414_v29 = vpack.i.bf16 %v1132_v19, %v1121_v26 }
  0x37   :  { %1067 = vst.msk [vmem:[#allocation0 + $0x20] sm:$0xff] %vm1030_vm1, %v1064_v24   ;;  %v1044_v28 = vld [vmem:[#allocation1 + $0x80] ss:$8 sm:$0xf0]  }
  0x38   :  { %v1046_v30 = vsel %vm1028_vm0, %v1044_v28, %v1042_v25  ;;  %v1078_v31 = vld [vmem:[#allocation1 + $0x180] ss:$8 sm:$0xf]   ;;  %v1172_v33 = vld [vmem:[#allocation1 + $0x1c1] ss:$8 sm:$0xf]   ;;  %1415 = vrot.lane.b32.xlu0 %v1414_v29, %s1429_s7 }
  0x39   :  { %v1080_v32 = vld [vmem:[#allocation1 + $0x180] ss:$8 sm:$0xf0]   ;;  %1049 = vst.msk [vmem:[#allocation0 + $0x10] sm:$0xff] %vm1030_vm1, %v1046_v30   ;;  %v1176_v41 = vsel %vm1028_vm0, %v1174_v27, %v1172_v33 }
  0x3a   :  { %v1082_v34 = vsel %vm1028_vm0, %v1080_v32, %v1078_v31  ;;  %v1033_v35 = vld [vmem:[#allocation1 + $0x40] ss:$8 sm:$0xf]   ;;  %v1163_v38 = vld [vmem:[#allocation1 + $0xc1] ss:$8 sm:$0xf0]  }
  0x3b   :  { %1085 = vst.msk [vmem:[#allocation0 + $0x30] sm:$0xff] %vm1030_vm1, %v1082_v34   ;;  %v1035_v36 = vld [vmem:[#allocation1 + $0x40] ss:$8 sm:$0xf0]  }
  0x3c   :  { %v1069_v37 = vld [vmem:[#allocation1 + $0x140] ss:$8 sm:$0xf]   ;;  %v1037_v39 = vsel %vm1028_vm0, %v1035_v36, %v1033_v35  ;;  %v1161_v45 = vld [vmem:[#allocation1 + $0xc1] ss:$8 sm:$0xf]  }
  0x3d   :  { %v1071_v40 = vld [vmem:[#allocation1 + $0x140] ss:$8 sm:$0xf0]   ;;  %1040 = vst.msk [vmem:[#allocation0 + $0x8] sm:$0xff] %vm1030_vm1, %v1037_v39   ;;  %v1165_v47 = vsel %vm1028_vm0, %v1163_v38, %v1161_v45 }
  0x3e   :  { %v1073_v42 = vsel %vm1028_vm0, %v1071_v40, %v1069_v37  ;;  %v1053_v43 = vld [vmem:[#allocation1 + $0xc0] ss:$8 sm:$0xf0]   ;;  %v1424_v50 = vpack.i.bf16 %v1176_v41, %v1165_v47 }
  0x3f   :  { %v1087_v44 = vld [vmem:[#allocation1 + $0x1c0] ss:$8 sm:$0xf]   ;;  %1076 = vst.msk [vmem:[#allocation0 + $0x28] sm:$0xff] %vm1030_vm1, %v1073_v42  }
  0x40   :  { %v1051_v46 = vld [vmem:[#allocation1 + $0xc0] ss:$8 sm:$0xf]   ;;  %1425 = vrot.lane.b32.xlu1 %v1424_v50, %s1429_s7 }
  0x41   :  { %v1055_v48 = vsel %vm1028_vm0, %v1053_v43, %v1051_v46  ;;  %v1089_v49 = vld [vmem:[#allocation1 + $0x1c0] ss:$8 sm:$0xf0]  }
  0x42   :  { %1058 = vst.msk [vmem:[#allocation0 + $0x18] sm:$0xff] %vm1030_vm1, %v1055_v48   ;;  %v1091_v51 = vsel %vm1028_vm0, %v1089_v49, %v1087_v44 }
  0x43   :  { %1094 = vst.msk [vmem:[#allocation0 + $0x38] sm:$0xff] %vm1030_vm1, %v1091_v51  }
  0x91   :  { %v1411_v52 = vpop.permute.xlu0 %1410 }
  0x92   :  { %v1413_v53 = vunpack.i.h.bf16 %v1411_v52  ;;  %v1412_v54 = vunpack.i.l.bf16 %v1411_v52 }
  0x94   :  { %1104 = vst.msk [vmem:[#allocation0] sm:$0xff] %vm1103_vm2, %v1412_v54   ;;  %1115 = vst.msk [vmem:[#allocation0 + $0x20] sm:$0xff] %vm1103_vm2, %v1413_v53  }
  0x98   :  { %v1421_v55 = vpop.permute.xlu1 %1420 }
  0x99   :  { %v1423_v56 = vunpack.i.h.bf16 %v1421_v55  ;;  %v1422_v57 = vunpack.i.l.bf16 %v1421_v55 }
  0x9b   :  { %1148 = vst.msk [vmem:[#allocation0 + $0x10] sm:$0xff] %vm1103_vm2, %v1422_v57   ;;  %1159 = vst.msk [vmem:[#allocation0 + $0x30] sm:$0xff] %vm1103_vm2, %v1423_v56   ;;  %v1187_v0 = vld [vmem:[#allocation0] sm:$0xff] }
  0x9c   :  { %v1216_v1 = vld [vmem:[#allocation0 + $0x20] sm:$0xff] }
  0xa2   :  { %v1200_v6 = vld [vmem:[#allocation0 + $0x10] sm:$0xff] }
  0xa3   :  { %v1232_v7 = vld [vmem:[#allocation0 + $0x30] sm:$0xff] }
  0xaa   :  { %v1416_v58 = vpop.permute.xlu0 %1415 }
  0xab   :  { %v1418_v59 = vunpack.i.h.bf16 %v1416_v58  ;;  %v1417_v60 = vunpack.i.l.bf16 %v1416_v58 }
  0xad   :  { %1126 = vst.msk [vmem:[#allocation0 + $0x8] sm:$0xff] %vm1103_vm2, %v1417_v60   ;;  %1137 = vst.msk [vmem:[#allocation0 + $0x28] sm:$0xff] %vm1103_vm2, %v1418_v59  }
  0xb2   :  { %v1426_v61 = vpop.permute.xlu1 %1425 }
  0xb3   :  { %v1428_v62 = vunpack.i.h.bf16 %v1426_v61  ;;  %v1427_v63 = vunpack.i.l.bf16 %v1426_v61 }
  0xb4   :  { %v1193_v2 = vld [vmem:[#allocation0 + $0x8] sm:$0xff] }
  0xb5   :  { %v1224_v3 = vld [vmem:[#allocation0 + $0x28] sm:$0xff]  ;;  %1170 = vst.msk [vmem:[#allocation0 + $0x18] sm:$0xff] %vm1103_vm2, %v1427_v63   ;;  %1181 = vst.msk [vmem:[#allocation0 + $0x38] sm:$0xff] %vm1103_vm2, %v1428_v62   ;;  %v1388_v4 = vpack.c.bf16 %v1193_v2, %v1187_v0 }
  0xb6   :  { %v1398_v5 = vpack.c.bf16 %v1224_v3, %v1216_v1 }
  0xb7   :  { %1389 = vst [vmem:[%s1681_s1] sm:$0xff] %v1388_v4  }
  0xb8   :  { %1406 = vst [vmem:[%s1681_s1 + $0x10] sm:$0xff] %v1398_v5  }
  0xbc   :  { %v1208_v8 = vld [vmem:[#allocation0 + $0x18] sm:$0xff] }
  0xbd   :  { %v1240_v9 = vld [vmem:[#allocation0 + $0x38] sm:$0xff]  ;;  %v1393_v10 = vpack.c.bf16 %v1208_v8, %v1200_v6 }
  0xbe   :  { %v1403_v11 = vpack.c.bf16 %v1240_v9, %v1232_v7 }
  0xbf   :  { %1405 = vst [vmem:[%s1681_s1 + $0x8] sm:$0xff] %v1393_v10  }
  0xc0   :  { %1407 = vst [vmem:[%s1681_s1 + $0x18] sm:$0xff] %v1403_v11  }

// kernel: encoder_separator_decoder.1
= control target key start
LH: loop header
LB: loop body
LE: loop exit
PB: predicated region body
PF: predicated region fallthrough
CT: control target
= control target key end

     0   :  { %s2149_s12 = smov 0   ;;  %s2575_s0 = inlined_call_operand.vmem [shape: bf16[512,64], index: 0, kind: input, shape index: {}]   ;;  %s2576_s1 = inlined_call_operand.vmem [shape: bf16[384,128], index: 1, kind: input, shape index: {}]   ;;  %s2577_s2 = inlined_call_operand.vmem [shape: f32[4,128], index: 2, kind: input, shape index: {}]   ;;  %s2578_s3 = inlined_call_operand.vmem [shape: f32[512,128], index: 3, kind: output, shape index: {}]  }
   0x1 LB: > { %s1565_s13 = sadd.s32 4294967295, %s2127_s12   ;;  %p1569_p0 = scmp.ge.s32.totalorder %s2127_s12, 1  ;;  %s2127_s12 = sphi %s2149_s12, %s13_s12  }
   0x2   : > { %p138_p1 = scmp.lt.s32.totalorder %s2127_s12, 3 }
   0x4   : > { %p139_p2 = pnand %p1569_p0, %p138_p1 }
   0x5   : > { %s1570_s16 = sshll.u32 (!%p139_p2), %s1565_s13, 5 }
   0x6   : > { %142 = sbr.rel (%p139_p2) target bundleno = 731 (0x2db), region = 32  ;;  %p163_p3 = scmp.lt.s32.totalorder (!%p139_p2), %s1570_s16, 63 }
   0xb   : > { %v1952_v0 = vld [vmem:[%s2576_s1 + $0x38] sm:$0xff]   ;;  %v1953_v1 = vld [vmem:[%s2576_s1 + $0x30] sm:$0xff]   ;;  %v1954_v2 = vld [vmem:[%s2576_s1 + $0x28] sm:$0xff]   ;;  %s2580_s16 = smov (!%p163_p3, %s1570_s16), 63  ;;  %vm324_vm0 = vcmask 523264   ;;  %v216_v35 = vlaneseq }
   0xc   : > { %1808 = vmatprep.subr.bf16.mxu1 %v1952_v0  ;;  %v1972_v3 = vld [vmem:[%s2576_s1 + $0x18] sm:$0xff]   ;;  %s1571_s23 = sshll.u32 %s2580_s16, 2  ;;  %v1973_v4 = vld [vmem:[%s2576_s1 + $0x10] sm:$0xff]   ;;  %v1955_v5 = vld [vmem:[%s2576_s1 + $0x20] sm:$0xff]   ;;  %s1573_s19 = sshll.u32 %s2580_s16, 3 }
   0xd   : > { %1809 = vmatpush3.bf16.msra.mxu1 %v1952_v0  ;;  %s2181_s30 = scalar_lea.vmem %s2575_s0, %s1571_s23  ;;  %1768 = vmatprep.subr.bf16.mxu0 %v1972_v3  ;;  %v1974_v7 = vld [vmem:[%s2576_s1 + $0x8] sm:$0xff]   ;;  %v1975_v12 = vld [vmem:[%s2576_s1] sm:$0xff]   ;;  %v1976_v13 = vld [vmem:[%s2576_s1 + $0x78] sm:$0xff]   ;;  %v2270_v36 = vshrl.u32 %v216_v35, 7  ;;  %s2506_s24 = scalar_lea.vmem %s2578_s3, %s1573_s19 }
   0xe   : > { %1810 = vmatprep.subr.bf16.mxu1 %v1953_v1  ;;  %v1956_v6 = vld [vmem:[%s2181_s30] sm:$0xff]   ;;  %1769 = vmatpush3.bf16.msra.mxu0 %v1972_v3  ;;  %v1957_v8 = vld [vmem:[%s2181_s30 + $0x8] sm:$0xff]   ;;  %v1958_v9 = vld [vmem:[%s2181_s30 + $0x10] sm:$0xff]  }
   0xf   : > { %1770 = vmatprep.subr.bf16.mxu0 %v1973_v4  ;;  %1816 = vmatprep.mubr.msk.bf16.mxu1 %vm324_vm0, %v1956_v6  ;;  %v1959_v10 = vld [vmem:[%s2181_s30 + $0x18] sm:$0xff]   ;;  %v1960_v11 = vld [vmem:[%s2181_s30 + $0x20] sm:$0xff]   ;;  %v1977_v14 = vld [vmem:[%s2576_s1 + $0x70] sm:$0xff]   ;;  %v544_v37 = vsub.s32 1, %v2270_v36 }
  0x10   : > { %1776 = vmatprep.mubr.msk.bf16.mxu0 %vm324_vm0, %v1956_v6  ;;  %v1961_v15 = vld [vmem:[%s2181_s30 + $0x28] sm:$0xff]   ;;  %v1962_v16 = vld [vmem:[%s2181_s30 + $0x30] sm:$0xff]   ;;  %v1979_v18 = vld [vmem:[%s2576_s1 + $0x60] sm:$0xff]  }
  0x11   : > { %1811 = vmatpush3.bf16.msra.mxu1 %v1953_v1  ;;  %v1978_v17 = vld [vmem:[%s2576_s1 + $0x68] sm:$0xff]   ;;  %v1963_v19 = vld [vmem:[%s2181_s30 + $0x38] sm:$0xff]   ;;  %v1964_v20 = vld [vmem:[%s2181_s30 + $0x40] sm:$0xff]  }
  0x12   : > { %1812 = vmatprep.subr.bf16.mxu1 %v1954_v2  ;;  %1771 = vmatpush3.bf16.msra.mxu0 %v1973_v4  ;;  %v1980_v21 = vld [vmem:[%s2576_s1 + $0x58] sm:$0xff]   ;;  %v1981_v22 = vld [vmem:[%s2576_s1 + $0x50] sm:$0xff]   ;;  %v1965_v23 = vld [vmem:[%s2181_s30 + $0x48] sm:$0xff]  }
  0x13   : > { %1772 = vmatprep.subr.bf16.mxu0 %v1974_v7  ;;  %v1966_v24 = vld [vmem:[%s2181_s30 + $0x50] sm:$0xff]   ;;  %v1982_v25 = vld [vmem:[%s2576_s1 + $0x48] sm:$0xff]   ;;  %v1967_v26 = vld [vmem:[%s2181_s30 + $0x58] sm:$0xff]  }
  0x14   : > { %v1968_v27 = vld [vmem:[%s2181_s30 + $0x60] sm:$0xff]   ;;  %v1969_v28 = vld [vmem:[%s2181_s30 + $0x68] sm:$0xff]   ;;  %v1970_v29 = vld [vmem:[%s2181_s30 + $0x70] sm:$0xff]  }
  0x15   : > { %1813 = vmatpush3.bf16.msra.mxu1 %v1954_v2  ;;  %v1971_v30 = vld [vmem:[%s2181_s30 + $0x78] sm:$0xff]   ;;  %v1983_v31 = vld [vmem:[%s2576_s1 + $0x40] sm:$0xff]   ;;  %v1985_v33 = vld [vmem:[%s2576_s1 + $0xb0] sm:$0xff]  }
  0x16   : > { %1814 = vmatprep.subr.bf16.mxu1 %v1955_v5  ;;  %1773 = vmatpush3.bf16.msra.mxu0 %v1974_v7  ;;  %v1984_v32 = vld [vmem:[%s2576_s1 + $0xb8] sm:$0xff]   ;;  %v1986_v34 = vld [vmem:[%s2576_s1 + $0xa8] sm:$0xff]   ;;  %v2276_v38 = vld [vmem:[%s2577_s2] sm:$0xf] }
  0x17   : > { %1774 = vmatprep.subr.bf16.mxu0 %v1975_v12  ;;  %v2279_v40 = vrot.slane %v2276_v38, %v544_v37 }
  0x19   : > { %1815 = vmatpush3.bf16.msra.mxu1 %v1955_v5 }
  0x1a   : > { %1775 = vmatpush3.bf16.msra.mxu0 %v1975_v12  ;;  %1896 = vmatprep.subr.bf16.mxu1 %v1984_v32 }
  0x1b   : > { %1848 = vmatprep.subr.bf16.mxu0 %v1976_v13 }
  0x1c   : > { %1817 = vmatmul.mubr.msk.bf16.vlgmr.msra.gmra.mxu1 %vm324_vm0, %v1957_v8 }
  0x1d   : > { %1820 = vmatprep.mubr.msk.bf16.mxu1 %vm324_vm0, %v1958_v9  ;;  %1777 = vmatmul.mubr.msk.bf16.vlgmr.msra.gmra.mxu0 %vm324_vm0, %v1957_v8 }
  0x1e   : > { %1849 = vmatpush3.bf16.msra.mxu0 %v1976_v13  ;;  %1780 = vmatprep.mubr.msk.bf16.mxu0 %vm324_vm0, %v1958_v9 }
  0x1f   : > { %1850 = vmatprep.subr.bf16.mxu0 %v1977_v14  ;;  %1897 = vmatpush3.bf16.msra.mxu1 %v1984_v32 }
  0x20   : > { %1898 = vmatprep.subr.bf16.mxu1 %v1985_v33 }
  0x22   : > { %1851 = vmatpush3.bf16.msra.mxu0 %v1977_v14 }
  0x23   : > { %1852 = vmatprep.subr.bf16.mxu0 %v1978_v17  ;;  %1899 = vmatpush3.bf16.msra.mxu1 %v1985_v33 }
  0x24   : > { %1821 = vmatmul.mubr.msk.bf16.gmra.mxu1 %vm324_vm0, %v1959_v10  ;;  %1900 = vmatprep.subr.bf16.mxu1 %v1986_v34 }
  0x25   : > { %1824 = vmatprep.mubr.msk.bf16.mxu1 %vm324_vm0, %v1960_v11  ;;  %1781 = vmatmul.mubr.msk.bf16.gmra.mxu0 %vm324_vm0, %v1959_v10 }
  0x26   : > { %1784 = vmatprep.mubr.msk.bf16.mxu0 %vm324_vm0, %v1960_v11  ;;  %1853 = vmatpush3.bf16.msra.mxu0 %v1978_v17 }
  0x27   : > { %1854 = vmatprep.subr.bf16.mxu0 %v1979_v18  ;;  %1901 = vmatpush3.bf16.msra.mxu1 %v1986_v34 }
  0x2a   : > { %1855 = vmatpush3.bf16.msra.mxu0 %v1979_v18 }
  0x2b   : > { %1856 = vmatprep.subr.bf16.mxu0 %v1980_v21 }
  0x2c   : > { %1825 = vmatmul.mubr.msk.bf16.gmra.mxu1 %vm324_vm0, %v1961_v15 }
  0x2d   : > { %1828 = vmatprep.mubr.msk.bf16.mxu1 %vm324_vm0, %v1962_v16  ;;  %1785 = vmatmul.mubr.msk.bf16.gmra.mxu0 %vm324_vm0, %v1961_v15 }
  0x2e   : > { %1788 = vmatprep.mubr.msk.bf16.mxu0 %vm324_vm0, %v1962_v16  ;;  %1857 = vmatpush3.bf16.msra.mxu0 %v1980_v21 }
  0x2f   : > { %1858 = vmatprep.subr.bf16.mxu0 %v1981_v22 }
  0x32   : > { %1859 = vmatpush3.bf16.msra.mxu0 %v1981_v22 }
  0x33   : > { %1860 = vmatprep.subr.bf16.mxu0 %v1982_v25 }
  0x34   : > { %1829 = vmatmul.mubr.msk.bf16.gmra.mxu1 %vm324_vm0, %v1963_v19 }
  0x35   : > { %1832 = vmatprep.mubr.msk.bf16.mxu1 %vm324_vm0, %v1964_v20  ;;  %1789 = vmatmul.mubr.msk.bf16.gmra.mxu0 %vm324_vm0, %v1963_v19 }
  0x36   : > { %1792 = vmatprep.mubr.msk.bf16.mxu0 %vm324_vm0, %v1964_v20  ;;  %1861 = vmatpush3.bf16.msra.mxu0 %v1982_v25 }
  0x37   : > { %1862 = vmatprep.subr.bf16.mxu0 %v1983_v31 }
  0x3a   : > { %1863 = vmatpush3.bf16.msra.mxu0 %v1983_v31 }
  0x3c   : > { %1833 = vmatmul.mubr.msk.bf16.gmra.mxu1 %vm324_vm0, %v1965_v23 }
  0x3d   : > { %1836 = vmatprep.mubr.msk.bf16.mxu1 %vm324_vm0, %v1966_v24  ;;  %1793 = vmatmul.mubr.msk.bf16.gmra.mxu0 %vm324_vm0, %v1965_v23 }
  0x3e   : > { %1796 = vmatprep.mubr.msk.bf16.mxu0 %vm324_vm0, %v1966_v24 }
  0x44   : > { %1837 = vmatmul.mubr.msk.bf16.gmra.mxu1 %vm324_vm0, %v1967_v26 }
  0x45   : > { %1840 = vmatprep.mubr.msk.bf16.mxu1 %vm324_vm0, %v1968_v27  ;;  %1797 = vmatmul.mubr.msk.bf16.gmra.mxu0 %vm324_vm0, %v1967_v26 }
  0x46   : > { %1800 = vmatprep.mubr.msk.bf16.mxu0 %vm324_vm0, %v1968_v27 }
  0x4c   : > { %1841 = vmatmul.mubr.msk.bf16.gmra.mxu1 %vm324_vm0, %v1969_v28 }
  0x4d   : > { %1844 = vmatprep.mubr.msk.bf16.mxu1 %vm324_vm0, %v1970_v29  ;;  %1801 = vmatmul.mubr.msk.bf16.gmra.mxu0 %vm324_vm0, %v1969_v28 }
  0x4e   : > { %1804 = vmatprep.mubr.msk.bf16.mxu0 %vm324_vm0, %v1970_v29 }
  0x54   : > { %1845 = vmatmul.mubr.msk.bf16.gmra.mxu1 %vm324_vm0, %v1971_v30 }
  0x55   : > { %1805 = vmatmul.mubr.msk.bf16.gmra.mxu0 %vm324_vm0, %v1971_v30 }
  0xdc   : > { %v1818_v39 = vpop.f32.mrf.mxu1 }
  0xdd   : > { %v613_v45 = vadd.f32 %v1818_v39, %v2279_v40 }
  0xde   : > { %v604_v41 = vpop.f32.mrf.mxu1 }
  0xdf   : > { %v605_v43 = vadd.f32 %v604_v41, %v2279_v40  ;;  %v733_v52 = vmax.f32 %v613_v45, 0.0 }
  0xe0   : > { %v1819_v42 = vpop.f32.mrf.mxu1 }
  0xe1   : > { %v616_v44 = vadd.f32 %v1819_v42, %v2279_v40  ;;  %v731_v50 = vmax.f32 %v605_v43, 0.0 }
  0xe2   : > { %v607_v46 = vpop.f32.mrf.mxu1 }
  0xe3   : > { %v608_v47 = vadd.f32 %v607_v46, %v2279_v40  ;;  %v734_v48 = vmax.f32 %v616_v44, 0.0 }
  0xe4   : > { %v1822_v49 = vpop.f32.mrf.mxu1 }
  0xe5   : > { %v732_v51 = vmax.f32 %v608_v47, 0.0  ;;  %v764_v55 = vpack.c.bf16 %v734_v48, %v733_v52  ;;  %v629_v59 = vadd.f32 %v1822_v49, %v2279_v40 }
  0xe6   : > { %v620_v53 = vpop.f32.mrf.mxu1 }
  0xe7   : > { %v763_v54 = vpack.c.bf16 %v732_v51, %v731_v50  ;;  %v621_v57 = vadd.f32 %v620_v53, %v2279_v40  ;;  %v737_v2 = vmax.f32 %v629_v59, 0.0 }
  0xe8   : > { %v1823_v56 = vpop.f32.mrf.mxu1 }
  0xe9   : > { %v632_v58 = vadd.f32 %v1823_v56, %v2279_v40  ;;  %1864 = vmatprep.mubr.bf16.mxu0 %v763_v54  ;;  %v735_v0 = vmax.f32 %v621_v57, 0.0 }
  0xea   : > { %v623_v60 = vpop.f32.mrf.mxu1  ;;  %1865 = vmatmul.mubr.bf16.vlgmr.msra.gmra.mxu0 %v764_v55 }
  0xeb   : > { %v624_v61 = vadd.f32 %v623_v60, %v2279_v40  ;;  %v738_v62 = vmax.f32 %v632_v58, 0.0 }
  0xec   : > { %v1826_v63 = vpop.f32.mrf.mxu1 }
  0xed   : > { %v736_v1 = vmax.f32 %v624_v61, 0.0  ;;  %v766_v5 = vpack.c.bf16 %v738_v62, %v737_v2  ;;  %v645_v9 = vadd.f32 %v1826_v63, %v2279_v40 }
  0xee   : > { %v636_v3 = vpop.f32.mrf.mxu1 }
  0xef   : > { %v765_v4 = vpack.c.bf16 %v736_v1, %v735_v0  ;;  %v637_v7 = vadd.f32 %v636_v3, %v2279_v40  ;;  %v741_v16 = vmax.f32 %v645_v9, 0.0 }
  0xf0   : > { %v1827_v6 = vpop.f32.mrf.mxu1 }
  0xf1   : > { %v648_v8 = vadd.f32 %v1827_v6, %v2279_v40  ;;  %1868 = vmatprep.mubr.bf16.mxu0 %v765_v4  ;;  %v739_v14 = vmax.f32 %v637_v7, 0.0 }
  0xf2   : > { %v639_v10 = vpop.f32.mrf.mxu1  ;;  %1869 = vmatmul.mubr.bf16.gmra.mxu0 %v766_v5 }
  0xf3   : > { %v640_v11 = vadd.f32 %v639_v10, %v2279_v40  ;;  %v742_v12 = vmax.f32 %v648_v8, 0.0 }
  0xf4   : > { %v1830_v13 = vpop.f32.mrf.mxu1 }
  0xf5   : > { %v740_v15 = vmax.f32 %v640_v11, 0.0  ;;  %v768_v19 = vpack.c.bf16 %v742_v12, %v741_v16  ;;  %v661_v23 = vadd.f32 %v1830_v13, %v2279_v40 }
  0xf6   : > { %v652_v17 = vpop.f32.mrf.mxu1 }
  0xf7   : > { %v767_v18 = vpack.c.bf16 %v740_v15, %v739_v14  ;;  %v653_v21 = vadd.f32 %v652_v17, %v2279_v40  ;;  %v745_v30 = vmax.f32 %v661_v23, 0.0 }
  0xf8   : > { %v1831_v20 = vpop.f32.mrf.mxu1 }
  0xf9   : > { %v664_v22 = vadd.f32 %v1831_v20, %v2279_v40  ;;  %1872 = vmatprep.mubr.bf16.mxu0 %v767_v18  ;;  %v743_v28 = vmax.f32 %v653_v21, 0.0 }
  0xfa   : > { %v655_v24 = vpop.f32.mrf.mxu1  ;;  %1873 = vmatmul.mubr.bf16.gmra.mxu0 %v768_v19 }
  0xfb   : > { %v656_v25 = vadd.f32 %v655_v24, %v2279_v40  ;;  %v746_v26 = vmax.f32 %v664_v22, 0.0 }
  0xfc   : > { %v1834_v27 = vpop.f32.mrf.mxu1 }
  0xfd   : > { %v744_v29 = vmax.f32 %v656_v25, 0.0  ;;  %v770_v33 = vpack.c.bf16 %v746_v26, %v745_v30  ;;  %v677_v39 = vadd.f32 %v1834_v27, %v2279_v40  ;;  %v2313_v27 = vpop.f32.mrf.mxu0 }
  0xfe   : > { %v668_v31 = vpop.f32.mrf.mxu1 }
  0xff   : > { %v769_v32 = vpack.c.bf16 %v744_v29, %v743_v28  ;;  %v669_v35 = vadd.f32 %v668_v31, %v2279_v40  ;;  %v749_v47 = vmax.f32 %v677_v39, 0.0  ;;  %v2315_v28 = vpop.f32.mrf.mxu0 }
 0x100   : > { %v1835_v34 = vpop.f32.mrf.mxu1 }
 0x101   : > { %v680_v37 = vadd.f32 %v1835_v34, %v2279_v40  ;;  %1876 = vmatprep.mubr.bf16.mxu0 %v769_v32  ;;  %v747_v45 = vmax.f32 %v669_v35, 0.0  ;;  %v2317_v29 = vpop.f32.mrf.mxu0  ;;  %v1988_v34 = vld [vmem:[%s2576_s1 + $0x98] sm:$0xff]  }
 0x102   : > { %v671_v41 = vpop.f32.mrf.mxu1  ;;  %1877 = vmatmul.mubr.bf16.gmra.mxu0 %v770_v33 }
 0x103   : > { %v672_v42 = vadd.f32 %v671_v41, %v2279_v40  ;;  %v750_v43 = vmax.f32 %v680_v37, 0.0  ;;  %v2319_v30 = vpop.f32.mrf.mxu0  ;;  %v1989_v37 = vld [vmem:[%s2576_s1 + $0x90] sm:$0xff]   ;;  %v1990_v41 = vld [vmem:[%s2576_s1 + $0x88] sm:$0xff]  }
 0x104   : > { %v1838_v44 = vpop.f32.mrf.mxu1 }
 0x105   : > { %v748_v46 = vmax.f32 %v672_v42, 0.0  ;;  %v772_v50 = vpack.c.bf16 %v750_v43, %v749_v47  ;;  %v693_v54 = vadd.f32 %v1838_v44, %v2279_v40  ;;  %v2321_v31 = vpop.f32.mrf.mxu0  ;;  %v1991_v43 = vld [vmem:[%s2576_s1 + $0x80] sm:$0xff]  }
 0x106   : > { %v684_v48 = vpop.f32.mrf.mxu1 }
 0x107   : > { %v771_v49 = vpack.c.bf16 %v748_v46, %v747_v45  ;;  %v685_v52 = vadd.f32 %v684_v48, %v2279_v40  ;;  %v753_v61 = vmax.f32 %v693_v54, 0.0  ;;  %v2323_v32 = vpop.f32.mrf.mxu0 }
 0x108   : > { %v1839_v51 = vpop.f32.mrf.mxu1 }
 0x109   : > { %v696_v53 = vadd.f32 %v1839_v51, %v2279_v40  ;;  %1880 = vmatprep.mubr.bf16.mxu0 %v771_v49  ;;  %v751_v59 = vmax.f32 %v685_v52, 0.0  ;;  %v2328_v33 = vpop.f32.mrf.mxu0 }
 0x10a   : > { %v687_v55 = vpop.f32.mrf.mxu1  ;;  %1881 = vmatmul.mubr.bf16.gmra.mxu0 %v772_v50 }
 0x10b   : > { %v688_v56 = vadd.f32 %v687_v55, %v2279_v40  ;;  %v754_v57 = vmax.f32 %v696_v53, 0.0  ;;  %v2333_v35 = vpop.f32.mrf.mxu0 }
 0x10c   : > { %v1842_v58 = vpop.f32.mrf.mxu1 }
 0x10d   : > { %v752_v60 = vmax.f32 %v688_v56, 0.0  ;;  %v774_v0 = vpack.c.bf16 %v754_v57, %v753_v61  ;;  %v709_v4 = vadd.f32 %v1842_v58, %v2279_v40  ;;  %v2338_v39 = vpop.f32.mrf.mxu0 }
 0x10e   : > { %v700_v62 = vpop.f32.mrf.mxu1 }
 0x10f   : > { %v773_v63 = vpack.c.bf16 %v752_v60, %v751_v59  ;;  %v701_v2 = vadd.f32 %v700_v62, %v2279_v40  ;;  %v757_v11 = vmax.f32 %v709_v4, 0.0  ;;  %v2343_v42 = vpop.f32.mrf.mxu0 }
 0x110   : > { %v1843_v1 = vpop.f32.mrf.mxu1 }
 0x111   : > { %v712_v3 = vadd.f32 %v1843_v1, %v2279_v40  ;;  %1884 = vmatprep.mubr.bf16.mxu0 %v773_v63  ;;  %v755_v9 = vmax.f32 %v701_v2, 0.0  ;;  %v2348_v44 = vpop.f32.mrf.mxu0 }
 0x112   : > { %v703_v5 = vpop.f32.mrf.mxu1  ;;  %1885 = vmatmul.mubr.bf16.gmra.mxu0 %v774_v0  ;;  %v797_v0 = vsub.s32 2, %v2270_v36 }
 0x113   : > { %v704_v6 = vadd.f32 %v703_v5, %v2279_v40  ;;  %v758_v7 = vmax.f32 %v712_v3, 0.0  ;;  %v2350_v45 = vpop.f32.mrf.mxu0 }
 0x114   : > { %v1846_v8 = vpop.f32.mrf.mxu1  ;;  %v2392_v2 = vrot.slane %v2276_v38, %v797_v0 }
 0x115   : > { %v756_v10 = vmax.f32 %v704_v6, 0.0  ;;  %v776_v14 = vpack.c.bf16 %v758_v7, %v757_v11  ;;  %v725_v18 = vadd.f32 %v1846_v8, %v2279_v40  ;;  %v2352_v46 = vpop.f32.mrf.mxu0 }
 0x116   : > { %v716_v12 = vpop.f32.mrf.mxu1 }
 0x117   : > { %v775_v13 = vpack.c.bf16 %v756_v10, %v755_v9  ;;  %v717_v16 = vadd.f32 %v716_v12, %v2279_v40  ;;  %v761_v24 = vmax.f32 %v725_v18, 0.0  ;;  %v2354_v47 = vpop.f32.mrf.mxu0 }
 0x118   : > { %v1847_v15 = vpop.f32.mrf.mxu1 }
 0x119   : > { %v728_v17 = vadd.f32 %v1847_v15, %v2279_v40  ;;  %1888 = vmatprep.mubr.bf16.mxu0 %v775_v13  ;;  %v759_v22 = vmax.f32 %v717_v16, 0.0  ;;  %v2356_v48 = vpop.f32.mrf.mxu0 }
 0x11a   : > { %v719_v19 = vpop.f32.mrf.mxu1  ;;  %1889 = vmatmul.mubr.bf16.gmra.mxu0 %v776_v14 }
 0x11b   : > { %v720_v20 = vadd.f32 %v719_v19, %v2279_v40  ;;  %v762_v21 = vmax.f32 %v728_v17, 0.0  ;;  %v1987_v40 = vld [vmem:[%s2576_s1 + $0xa0] sm:$0xff]   ;;  %v2358_v49 = vpop.f32.mrf.mxu0 }
 0x11c   : > { %1902 = vmatprep.subr.bf16.mxu1 %v1987_v40 }
 0x11d   : > { %v760_v23 = vmax.f32 %v720_v20, 0.0  ;;  %v778_v26 = vpack.c.bf16 %v762_v21, %v761_v24  ;;  %1903 = vmatpush3.bf16.msra.mxu1 %v1987_v40  ;;  %v2360_v50 = vpop.f32.mrf.mxu0 }
 0x11e   : > { %1904 = vmatprep.subr.bf16.mxu1 %v1988_v34 }
 0x11f   : > { %v777_v25 = vpack.c.bf16 %v760_v23, %v759_v22  ;;  %v2362_v51 = vpop.f32.mrf.mxu0 }
 0x121   : > { %1892 = vmatprep.mubr.bf16.mxu0 %v777_v25  ;;  %1905 = vmatpush3.bf16.msra.mxu1 %v1988_v34  ;;  %v2364_v52 = vpop.f32.mrf.mxu0 }
 0x122   : > { %1893 = vmatmul.mubr.bf16.gmra.mxu0 %v778_v26  ;;  %1906 = vmatprep.subr.bf16.mxu1 %v1989_v37 }
 0x123   : > { %v2366_v53 = vpop.f32.mrf.mxu0 }
 0x125   : > { %1907 = vmatpush3.bf16.msra.mxu1 %v1989_v37  ;;  %v2368_v54 = vpop.f32.mrf.mxu0 }
 0x126   : > { %1908 = vmatprep.subr.bf16.mxu1 %v1990_v41 }
 0x127   : > { %v2370_v55 = vpop.f32.mrf.mxu0 }
 0x129   : > { %1909 = vmatpush3.bf16.msra.mxu1 %v1990_v41  ;;  %v2372_v56 = vpop.f32.mrf.mxu0 }
 0x12a   : > { %1910 = vmatprep.subr.bf16.mxu1 %v1991_v43 }
 0x12b   : > { %v2374_v57 = vpop.f32.mrf.mxu0 }
 0x12d   : > { %1911 = vmatpush3.bf16.msra.mxu1 %v1991_v43  ;;  %v2376_v58 = vpop.f32.mrf.mxu0 }
 0x12f   : > { %v2378_v59 = vpop.f32.mrf.mxu0 }
 0x131   : > { %v2380_v60 = vpop.f32.mrf.mxu0 }
 0x133   : > { %v2382_v61 = vpop.f32.mrf.mxu0 }
 0x135   : > { %v2384_v62 = vpop.f32.mrf.mxu0 }
 0x137   : > { %v2386_v63 = vpop.f32.mrf.mxu0 }
 0x139   : > { %v2389_v1 = vpop.f32.mrf.mxu0 }
 0x13b   : > { %v2394_v3 = vpop.f32.mrf.mxu0 }
 0x1aa   : > { %v1866_v4 = vpop.f32.mrf.mxu0 }
 0x1ab   : > { %v890_v5 = vadd.f32 %v1866_v4, %v2392_v2 }
 0x1ac   : > { %v881_v6 = vpop.f32.mrf.mxu0 }
 0x1ad   : > { %v1640_v7 = vmul.f32 -1.442695, %v890_v5  ;;  %v882_v8 = vadd.f32 %v881_v6, %v2392_v2 }
 0x1ae   : > { %v1867_v9 = vpop.f32.mrf.mxu0 }
 0x1af   : > { %1992 = vpow2.f32 %v1640_v7  ;;  %v1638_v10 = vmul.f32 -1.442695, %v882_v8  ;;  %v893_v11 = vadd.f32 %v1867_v9, %v2392_v2 }
 0x1b0   : > { %v884_v12 = vpop.f32.mrf.mxu0 }
 0x1b1   : > { %1994 = vpow2.f32 %v1638_v10  ;;  %v1641_v13 = vmul.f32 -1.442695, %v893_v11  ;;  %v885_v14 = vadd.f32 %v884_v12, %v2392_v2 }
 0x1b2   : > { %v1870_v15 = vpop.f32.mrf.mxu0 }
 0x1b3   : > { %1996 = vpow2.f32 %v1641_v13  ;;  %v1639_v16 = vmul.f32 -1.442695, %v885_v14  ;;  %v906_v17 = vadd.f32 %v1870_v15, %v2392_v2 }
 0x1b4   : > { %v897_v18 = vpop.f32.mrf.mxu0 }
 0x1b5   : > { %1998 = vpow2.f32 %v1639_v16  ;;  %v1644_v19 = vmul.f32 -1.442695, %v906_v17  ;;  %v898_v20 = vadd.f32 %v897_v18, %v2392_v2 }
 0x1b6   : > { %v1871_v21 = vpop.f32.mrf.mxu0 }
 0x1b7   : > { %2000 = vpow2.f32 %v1644_v19  ;;  %v1642_v22 = vmul.f32 -1.442695, %v898_v20  ;;  %v909_v23 = vadd.f32 %v1871_v21, %v2392_v2 }
 0x1b8   : > { %v900_v24 = vpop.f32.mrf.mxu0 }
 0x1b9   : > { %2002 = vpow2.f32 %v1642_v22  ;;  %v1645_v25 = vmul.f32 -1.442695, %v909_v23  ;;  %v901_v26 = vadd.f32 %v900_v24, %v2392_v2 }
 0x1ba   : > { %v1874_v40 = vpop.f32.mrf.mxu0 }
 0x1bb   : > { %2004 = vpow2.f32 %v1645_v25  ;;  %v1643_v34 = vmul.f32 -1.442695, %v901_v26  ;;  %v922_v37 = vadd.f32 %v1874_v40, %v2392_v2  ;;  %v218_v40 = vsub.s32 0, %v2270_v36 }
 0x1bc   : > { %v1993_v41 = vpop.eup %1992  ;;  %v913_v43 = vpop.f32.mrf.mxu0 }
 0x1bd   : > { %v1106_v0 = vadd.f32 1.0, %v1993_v41  ;;  %2006 = vpow2.f32 %v1643_v34  ;;  %v1648_v4 = vmul.f32 -1.442695, %v922_v37  ;;  %v914_v5 = vadd.f32 %v913_v43, %v2392_v2 }
 0x1be   : > { %v1995_v6 = vpop.eup %1994  ;;  %v1875_v7 = vpop.f32.mrf.mxu0 }
 0x1bf   : > { %2008 = vrcp.f32 %v1106_v0  ;;  %v1104_v8 = vadd.f32 1.0, %v1995_v6  ;;  %v1646_v9 = vmul.f32 -1.442695, %v914_v5  ;;  %v925_v10 = vadd.f32 %v1875_v7, %v2392_v2 }
 0x1c0   : > { %v1997_v11 = vpop.eup %1996  ;;  %2010 = vpow2.f32 %v1648_v4  ;;  %v916_v12 = vpop.f32.mrf.mxu0 }
 0x1c1   : > { %2012 = vrcp.f32 %v1104_v8  ;;  %v1107_v13 = vadd.f32 1.0, %v1997_v11  ;;  %v1649_v14 = vmul.f32 -1.442695, %v925_v10  ;;  %v917_v15 = vadd.f32 %v916_v12, %v2392_v2 }
 0x1c2   : > { %v1999_v16 = vpop.eup %1998  ;;  %2014 = vpow2.f32 %v1646_v9  ;;  %v1878_v17 = vpop.f32.mrf.mxu0  ;;  %v2414_v9 = vrot.slane %v2276_v38, %v218_v40 }
 0x1c3   : > { %2016 = vrcp.f32 %v1107_v13  ;;  %v1105_v18 = vadd.f32 1.0, %v1999_v16  ;;  %v1647_v19 = vmul.f32 -1.442695, %v917_v15  ;;  %v938_v20 = vadd.f32 %v1878_v17, %v2392_v2 }
 0x1c4   : > { %v2001_v21 = vpop.eup %2000  ;;  %2018 = vpow2.f32 %v1649_v14  ;;  %v929_v22 = vpop.f32.mrf.mxu0  ;;  %v416_v38 = vadd.f32 %v2313_v27, %v2414_v9  ;;  %v408_v40 = vadd.f32 %v2315_v28, %v2414_v9 }
 0x1c5   : > { %2020 = vrcp.f32 %v1105_v18  ;;  %v1110_v23 = vadd.f32 1.0, %v2001_v21  ;;  %v1652_v24 = vmul.f32 -1.442695, %v938_v20  ;;  %v930_v25 = vadd.f32 %v929_v22, %v2392_v2 }
 0x1c6   : > { %v2003_v26 = vpop.eup %2002  ;;  %2022 = vpow2.f32 %v1647_v19  ;;  %v1879_v34 = vpop.f32.mrf.mxu0 }
 0x1c7   : > { %2024 = vrcp.f32 %v1110_v23  ;;  %v1108_v37 = vadd.f32 1.0, %v2003_v26  ;;  %v1650_v41 = vmul.f32 -1.442695, %v930_v25  ;;  %v941_v43 = vadd.f32 %v1879_v34, %v2392_v2 }
 0x1c8   : > { %v2005_v0 = vpop.eup %2004  ;;  %2026 = vpow2.f32 %v1652_v24  ;;  %v932_v4 = vpop.f32.mrf.mxu0  ;;  %v419_v23 = vadd.f32 %v2317_v29, %v2414_v9  ;;  %v411_v34 = vadd.f32 %v2319_v30, %v2414_v9 }
 0x1c9   : > { %2028 = vrcp.f32 %v1108_v37  ;;  %v1111_v5 = vadd.f32 1.0, %v2005_v0  ;;  %v1653_v6 = vmul.f32 -1.442695, %v941_v43  ;;  %v933_v7 = vadd.f32 %v932_v4, %v2392_v2 }
 0x1ca   : > { %v2007_v8 = vpop.eup %2006  ;;  %2030 = vpow2.f32 %v1650_v41  ;;  %v1882_v10 = vpop.f32.mrf.mxu0 }
 0x1cb   : > { %2032 = vrcp.f32 %v1111_v5  ;;  %v1109_v11 = vadd.f32 1.0, %v2007_v8  ;;  %v1651_v12 = vmul.f32 -1.442695, %v933_v7  ;;  %v954_v13 = vadd.f32 %v1882_v10, %v2392_v2 }
 0x1cc   : > { %v2009_v14 = vpop.eup %2008  ;;  %2034 = vpow2.f32 %v1653_v6  ;;  %v945_v15 = vpop.f32.mrf.mxu0 }
 0x1cd   : > { %v2011_v16 = vpop.eup %2010  ;;  %2036 = vrcp.f32 %v1109_v11  ;;  %v1656_v17 = vmul.f32 -1.442695, %v954_v13  ;;  %v946_v18 = vadd.f32 %v945_v15, %v2392_v2  ;;  %v1202_v8 = vmul.f32 %v2009_v14, %v416_v38 }
 0x1ce   : > { %v2013_v19 = vpop.eup %2012  ;;  %v1114_v20 = vadd.f32 1.0, %v2011_v16  ;;  %2038 = vpow2.f32 %v1651_v12  ;;  %v1883_v21 = vpop.f32.mrf.mxu0 }
 0x1cf   : > { %v2015_v22 = vpop.eup %2014  ;;  %2040 = vpow2.f32 %v1656_v17  ;;  %v1654_v24 = vmul.f32 -1.442695, %v946_v18  ;;  %v957_v25 = vadd.f32 %v1883_v21, %v2392_v2  ;;  %v1200_v7 = vmul.f32 %v2013_v19, %v408_v40 }
 0x1d0   : > { %v2017_v26 = vpop.eup %2016  ;;  %2042 = vrcp.f32 %v1114_v20  ;;  %v1112_v27 = vadd.f32 1.0, %v2015_v22  ;;  %v948_v37 = vpop.f32.mrf.mxu0  ;;  %v432_v40 = vadd.f32 %v2321_v31, %v2414_v9 }
 0x1d1   : > { %v2019_v41 = vpop.eup %2018  ;;  %2044 = vpow2.f32 %v1654_v24  ;;  %v1657_v43 = vmul.f32 -1.442695, %v957_v25  ;;  %v949_v0 = vadd.f32 %v948_v37, %v2392_v2  ;;  %v1203_v29 = vmul.f32 %v2017_v26, %v419_v23 }
 0x1d2   : > { %v2021_v4 = vpop.eup %2020  ;;  %2046 = vrcp.f32 %v1112_v27  ;;  %v1115_v5 = vadd.f32 1.0, %v2019_v41  ;;  %v1886_v6 = vpop.f32.mrf.mxu0  ;;  %v435_v23 = vadd.f32 %v2328_v33, %v2414_v9 }
 0x1d3   : > { %v2023_v10 = vpop.eup %2022  ;;  %2048 = vpow2.f32 %v1657_v43  ;;  %v1655_v28 = vmul.f32 -1.442695, %v949_v0  ;;  %v970_v30 = vadd.f32 %v1886_v6, %v2392_v2  ;;  %v1201_v11 = vmul.f32 %v2021_v4, %v411_v34 }
 0x1d4   : > { %v2025_v12 = vpop.eup %2024  ;;  %2050 = vrcp.f32 %v1115_v5  ;;  %v1113_v13 = vadd.f32 1.0, %v2023_v10  ;;  %v961_v15 = vpop.f32.mrf.mxu0  ;;  %v1233_v16 = vpack.c.bf16 %v1203_v29, %v1202_v8  ;;  %v427_v34 = vadd.f32 %v2333_v35, %v2414_v9 }
 0x1d5   : > { %v2027_v17 = vpop.eup %2026  ;;  %2052 = vpow2.f32 %v1655_v28  ;;  %v1660_v18 = vmul.f32 -1.442695, %v970_v30  ;;  %v962_v20 = vadd.f32 %v961_v15, %v2392_v2  ;;  %v1232_v21 = vpack.c.bf16 %v1201_v11, %v1200_v7 }
 0x1d6   : > { %v2029_v22 = vpop.eup %2028  ;;  %2054 = vrcp.f32 %v1113_v13  ;;  %v1118_v14 = vadd.f32 1.0, %v2027_v17  ;;  %v1887_v19 = vpop.f32.mrf.mxu0  ;;  %v424_v4 = vadd.f32 %v2323_v32, %v2414_v9  ;;  %v1206_v6 = vmul.f32 %v2025_v12, %v432_v40 }
 0x1d7   : > { %v2031_v38 = vpop.eup %2030  ;;  %2056 = vpow2.f32 %v1660_v18  ;;  %v1658_v24 = vmul.f32 -1.442695, %v962_v20  ;;  %v973_v25 = vadd.f32 %v1887_v19, %v2392_v2  ;;  %1912 = vmatprep.mubr.bf16.mxu1 %v1232_v21 }
 0x1d8   : > { %v2033_v26 = vpop.eup %2032  ;;  %2058 = vrcp.f32 %v1118_v14  ;;  %v1116_v27 = vadd.f32 1.0, %v2031_v38  ;;  %v964_v37 = vpop.f32.mrf.mxu0  ;;  %1913 = vmatmul.mubr.bf16.vlgmr.msra.gmra.mxu1 %v1233_v16  ;;  %v1204_v13 = vmul.f32 %v2029_v22, %v424_v4  ;;  %v448_v22 = vadd.f32 %v2338_v39, %v2414_v9 }
 0x1d9   : > { %v2035_v41 = vpop.eup %2034  ;;  %2060 = vpow2.f32 %v1658_v24  ;;  %v1661_v43 = vmul.f32 -1.442695, %v973_v25  ;;  %v965_v33 = vadd.f32 %v964_v37, %v2392_v2  ;;  %v1207_v0 = vmul.f32 %v2033_v26, %v435_v23 }
 0x1da   : > { %v2037_v29 = vpop.eup %2036  ;;  %2062 = vrcp.f32 %v1116_v27  ;;  %v1119_v5 = vadd.f32 1.0, %v2035_v41  ;;  %v1890_v31 = vpop.f32.mrf.mxu0  ;;  %v440_v25 = vadd.f32 %v2343_v42, %v2414_v9  ;;  %v451_v26 = vadd.f32 %v2348_v44, %v2414_v9 }
 0x1db   : > { %v2039_v7 = vpop.eup %2038  ;;  %2064 = vpow2.f32 %v1661_v43  ;;  %v1659_v35 = vmul.f32 -1.442695, %v965_v33  ;;  %v986_v8 = vadd.f32 %v1890_v31, %v2392_v2  ;;  %v1205_v10 = vmul.f32 %v2037_v29, %v427_v34 }
 0x1dc   : > { %v2041_v28 = vpop.eup %2040  ;;  %2066 = vrcp.f32 %v1119_v5  ;;  %v1117_v30 = vadd.f32 1.0, %v2039_v7  ;;  %v977_v11 = vpop.f32.mrf.mxu0  ;;  %v1235_v15 = vpack.c.bf16 %v1207_v0, %v1206_v6  ;;  %v443_v39 = vadd.f32 %v2350_v45, %v2414_v9 }
 0x1dd   : > { %v2043_v16 = vpop.eup %2042  ;;  %v1122_v17 = vadd.f32 1.0, %v2041_v28  ;;  %2068 = vpow2.f32 %v1659_v35  ;;  %v1664_v32 = vmul.f32 -1.442695, %v986_v8  ;;  %v978_v18 = vadd.f32 %v977_v11, %v2392_v2 }
 0x1de   : > { %v2045_v20 = vpop.eup %2044  ;;  %2070 = vrcp.f32 %v1117_v30  ;;  %v1891_v12 = vpop.f32.mrf.mxu0  ;;  %v1234_v21 = vpack.c.bf16 %v1205_v10, %v1204_v13  ;;  %v1210_v42 = vmul.f32 %v2043_v16, %v448_v22 }
 0x1df   : > { %v2047_v14 = vpop.eup %2046  ;;  %2072 = vrcp.f32 %v1122_v17  ;;  %v1120_v19 = vadd.f32 1.0, %v2045_v20  ;;  %v1662_v38 = vmul.f32 -1.442695, %v978_v18  ;;  %v989_v23 = vadd.f32 %v1891_v12, %v2392_v2 }
 0x1e0   : > { %v2049_v24 = vpop.eup %2048  ;;  %2074 = vpow2.f32 %v1664_v32  ;;  %1916 = vmatprep.mubr.bf16.mxu1 %v1234_v21  ;;  %v980_v40 = vpop.f32.mrf.mxu0  ;;  %v1208_v7 = vmul.f32 %v2047_v14, %v440_v25  ;;  %v464_v12 = vadd.f32 %v2352_v46, %v2414_v9  ;;  %v456_v21 = vadd.f32 %v2354_v47, %v2414_v9 }
 0x1e1   : > { %v2051_v34 = vpop.eup %2050  ;;  %2076 = vrcp.f32 %v1120_v19  ;;  %v1123_v27 = vadd.f32 1.0, %v2049_v24  ;;  %v1665_v37 = vmul.f32 -1.442695, %v989_v23  ;;  %v981_v41 = vadd.f32 %v980_v40, %v2392_v2  ;;  %1917 = vmatmul.mubr.bf16.gmra.mxu1 %v1235_v15 }
 0x1e2   : > { %v2053_v43 = vpop.eup %2052  ;;  %2078 = vpow2.f32 %v1662_v38  ;;  %v1894_v33 = vpop.f32.mrf.mxu0  ;;  %v1211_v0 = vmul.f32 %v2051_v34, %v451_v26  ;;  %v467_v14 = vadd.f32 %v2356_v48, %v2414_v9  ;;  %v459_v46 = vadd.f32 %v2358_v49, %v2414_v9 }
 0x1e3   : > { %v2055_v29 = vpop.eup %2054  ;;  %2080 = vrcp.f32 %v1123_v27  ;;  %v1121_v44 = vadd.f32 1.0, %v2053_v43  ;;  %v1663_v4 = vmul.f32 -1.442695, %v981_v41  ;;  %v1002_v5 = vadd.f32 %v1894_v33, %v2392_v2 }
 0x1e4   : > { %v2057_v31 = vpop.eup %2056  ;;  %2082 = vpow2.f32 %v1665_v37  ;;  %v993_v6 = vpop.f32.mrf.mxu0  ;;  %v1209_v35 = vmul.f32 %v2055_v29, %v443_v39  ;;  %v1237_v8 = vpack.c.bf16 %v1211_v0, %v1210_v42  ;;  %v480_v49 = vadd.f32 %v2360_v50, %v2414_v9 }
 0x1e5   : > { %v2059_v10 = vpop.eup %2058  ;;  %2084 = vrcp.f32 %v1121_v44  ;;  %v1126_v28 = vadd.f32 1.0, %v2057_v31  ;;  %v1668_v45 = vmul.f32 -1.442695, %v1002_v5  ;;  %v994_v30 = vadd.f32 %v993_v6, %v2392_v2 }
 0x1e6   : > { %v2061_v11 = vpop.eup %2060  ;;  %2086 = vpow2.f32 %v1663_v4  ;;  %v1895_v13 = vpop.f32.mrf.mxu0  ;;  %v1236_v15 = vpack.c.bf16 %v1209_v35, %v1208_v7  ;;  %v1214_v26 = vmul.f32 %v2059_v10, %v464_v12  ;;  %v483_v29 = vadd.f32 %v2364_v52, %v2414_v9 }
 0x1e7   : > { %v2063_v16 = vpop.eup %2062  ;;  %2088 = vrcp.f32 %v1126_v28  ;;  %v1124_v17 = vadd.f32 1.0, %v2061_v11  ;;  %v1666_v32 = vmul.f32 -1.442695, %v994_v30  ;;  %v1005_v18 = vadd.f32 %v1895_v13, %v2392_v2 }
 0x1e8   : > { %v2065_v20 = vpop.eup %2064  ;;  %2090 = vpow2.f32 %v1668_v45  ;;  %1920 = vmatprep.mubr.bf16.mxu1 %v1236_v15  ;;  %v996_v19 = vpop.f32.mrf.mxu0  ;;  %v1212_v37 = vmul.f32 %v2063_v16, %v456_v21  ;;  %v472_v31 = vadd.f32 %v2362_v51, %v2414_v9  ;;  %v475_v6 = vadd.f32 %v2366_v53, %v2414_v9 }
 0x1e9   : > { %v2067_v38 = vpop.eup %2066  ;;  %2092 = vrcp.f32 %v1124_v17  ;;  %v1127_v23 = vadd.f32 1.0, %v2065_v20  ;;  %v1669_v24 = vmul.f32 -1.442695, %v1005_v18  ;;  %v997_v22 = vadd.f32 %v996_v19, %v2392_v2  ;;  %1921 = vmatmul.mubr.bf16.gmra.mxu1 %v1237_v8 }
 0x1ea   : > { %v2069_v25 = vpop.eup %2068  ;;  %2094 = vpow2.f32 %v1666_v32  ;;  %v1215_v47 = vmul.f32 %v2067_v38, %v467_v14  ;;  %v496_v17 = vadd.f32 %v2368_v54, %v2414_v9  ;;  %v499_v32 = vadd.f32 %v2372_v56, %v2414_v9 }
 0x1eb   : > { %v2071_v40 = vpop.eup %2070  ;;  %2096 = vrcp.f32 %v1127_v23  ;;  %v1125_v48 = vadd.f32 1.0, %v2069_v25  ;;  %v1667_v34 = vmul.f32 -1.442695, %v997_v22  ;;  %v488_v21 = vadd.f32 %v2370_v55, %v2414_v9 }
 0x1ec   : > { %v2073_v27 = vpop.eup %2072  ;;  %2098 = vpow2.f32 %v1669_v24  ;;  %v1213_v41 = vmul.f32 %v2071_v40, %v459_v46  ;;  %v1239_v43 = vpack.c.bf16 %v1215_v47, %v1214_v26  ;;  %v491_v14 = vadd.f32 %v2374_v57, %v2414_v9 }
 0x1ed   : > { %v2075_v39 = vpop.eup %2074  ;;  %2100 = vrcp.f32 %v1125_v48  ;;  %v1218_v7 = vmul.f32 %v2073_v27, %v480_v49  ;;  %v512_v57 = vadd.f32 %v2376_v58, %v2414_v9  ;;  %v515_v40 = vadd.f32 %v2380_v60, %v2414_v9 }
 0x1ee   : > { %v2077_v2 = vpop.eup %2076  ;;  %v1130_v33 = vadd.f32 1.0, %v2075_v39  ;;  %2102 = vpow2.f32 %v1667_v34  ;;  %v1238_v42 = vpack.c.bf16 %v1213_v41, %v1212_v37  ;;  %v504_v34 = vadd.f32 %v2378_v59, %v2414_v9 }
 0x1ef   : > { %v2079_v0 = vpop.eup %2078  ;;  %v1216_v28 = vmul.f32 %v2077_v2, %v472_v31  ;;  %v507_v27 = vadd.f32 %v2382_v61, %v2414_v9  ;;  %v528_v60 = vadd.f32 %v2384_v62, %v2414_v9  ;;  %v531_v49 = vadd.f32 %v2389_v1, %v2414_v9 }
 0x1f0   : > { %v2081_v44 = vpop.eup %2080  ;;  %v1128_v4 = vadd.f32 1.0, %v2079_v0  ;;  %1924 = vmatprep.mubr.bf16.mxu1 %v1238_v42  ;;  %2104 = vrcp.f32 %v1130_v33  ;;  %v520_v61 = vadd.f32 %v2386_v63, %v2414_v9  ;;  %v1266_v1 = vsub.s32 3, %v2270_v36 }
 0x1f1   : > { %v2083_v5 = vpop.eup %2082  ;;  %1925 = vmatmul.mubr.bf16.gmra.mxu1 %v1239_v43  ;;  %v1219_v35 = vmul.f32 %v2081_v44, %v483_v29  ;;  %v523_v29 = vadd.f32 %v2394_v3, %v2414_v9 }
 0x1f2   : > { %v2085_v8 = vpop.eup %2084  ;;  %v1131_v10 = vadd.f32 1.0, %v2083_v5  ;;  %2106 = vrcp.f32 %v1128_v4 }
 0x1f3   : > { %v2087_v50 = vpop.eup %2086  ;;  %v1217_v52 = vmul.f32 %v2085_v8, %v475_v6  ;;  %v1241_v45 = vpack.c.bf16 %v1219_v35, %v1218_v7  ;;  %v2120_v35 = vld [vmem:[%s2577_s2] sm:$0xf] }
 0x1f4   : > { %v2089_v30 = vpop.eup %2088  ;;  %2108 = vrcp.f32 %v1131_v10  ;;  %v1129_v11 = vadd.f32 1.0, %v2087_v50  ;;  %v2501_v63 = vrot.slane %v2120_v35, %v1266_v1 }
 0x1f5   : > { %v2091_v13 = vpop.eup %2090  ;;  %v1240_v15 = vpack.c.bf16 %v1217_v52, %v1216_v28  ;;  %v1222_v19 = vmul.f32 %v2089_v30, %v496_v17 }
 0x1f6   : > { %v2093_v51 = vpop.eup %2092  ;;  %2110 = vrcp.f32 %v1129_v11  ;;  %v1134_v16 = vadd.f32 1.0, %v2091_v13 }
 0x1f7   : > { %v2095_v53 = vpop.eup %2094  ;;  %1928 = vmatprep.mubr.bf16.mxu1 %v1240_v15  ;;  %v1220_v22 = vmul.f32 %v2093_v51, %v488_v21 }
 0x1f8   : > { %v2097_v18 = vpop.eup %2096  ;;  %v1132_v20 = vadd.f32 1.0, %v2095_v53  ;;  %2112 = vrcp.f32 %v1134_v16 }
 0x1f9   : > { %v2099_v12 = vpop.eup %2098  ;;  %1929 = vmatmul.mubr.bf16.gmra.mxu1 %v1241_v45  ;;  %v1223_v38 = vmul.f32 %v2097_v18, %v499_v32 }
 0x1fa   : > { %v2101_v23 = vpop.eup %2100  ;;  %v1135_v24 = vadd.f32 1.0, %v2099_v12  ;;  %2114 = vrcp.f32 %v1132_v20 }
 0x1fb   : > { %v2103_v54 = vpop.eup %2102  ;;  %v1221_v56 = vmul.f32 %v2101_v23, %v491_v14  ;;  %v1243_v25 = vpack.c.bf16 %v1223_v38, %v1222_v19 }
 0x1fc   : > { %2116 = vrcp.f32 %v1135_v24  ;;  %v1133_v46 = vadd.f32 1.0, %v2103_v54 }
 0x1fd   : > { %v1242_v26 = vpack.c.bf16 %v1221_v56, %v1220_v22  ;;  %v2105_v47 = vpop.eup %2104 }
 0x1fe   : > { %2118 = vrcp.f32 %v1133_v46  ;;  %v1226_v37 = vmul.f32 %v2105_v47, %v512_v57 }
 0x1ff   : > { %1932 = vmatprep.mubr.bf16.mxu1 %v1242_v26  ;;  %v2107_v55 = vpop.eup %2106 }
 0x200   : > { %v1224_v39 = vmul.f32 %v2107_v55, %v504_v34 }
 0x201   : > { %v2109_v48 = vpop.eup %2108  ;;  %1933 = vmatmul.mubr.bf16.gmra.mxu1 %v1243_v25 }
 0x202   : > { %v1227_v41 = vmul.f32 %v2109_v48, %v515_v40 }
 0x203   : > { %v2111_v43 = vpop.eup %2110 }
 0x204   : > { %v1225_v2 = vmul.f32 %v2111_v43, %v507_v27  ;;  %v1245_v33 = vpack.c.bf16 %v1227_v41, %v1226_v37 }
 0x205   : > { %v2113_v0 = vpop.eup %2112 }
 0x206   : > { %v1244_v42 = vpack.c.bf16 %v1225_v2, %v1224_v39  ;;  %v1230_v44 = vmul.f32 %v2113_v0, %v528_v60 }
 0x207   : > { %v2115_v58 = vpop.eup %2114 }
 0x208   : > { %1936 = vmatprep.mubr.bf16.mxu1 %v1244_v42  ;;  %v1228_v31 = vmul.f32 %v2115_v58, %v520_v61 }
 0x209   : > { %v2117_v59 = vpop.eup %2116  ;;  %1937 = vmatmul.mubr.bf16.gmra.mxu1 %v1245_v33 }
 0x20a   : > { %v1231_v4 = vmul.f32 %v2117_v59, %v531_v49 }
 0x20b   : > { %v2119_v5 = vpop.eup %2118 }
 0x20c   : > { %v1229_v6 = vmul.f32 %v2119_v5, %v523_v29  ;;  %v1247_v7 = vpack.c.bf16 %v1231_v4, %v1230_v44 }
 0x20e   : > { %v1246_v62 = vpack.c.bf16 %v1229_v6, %v1228_v31 }
 0x210   : > { %1940 = vmatprep.mubr.bf16.mxu1 %v1246_v62 }
 0x211   : > { %1941 = vmatmul.mubr.bf16.gmra.mxu1 %v1247_v7 }
 0x298   : > { %v1914_v3 = vpop.f32.mrf.mxu1 }
 0x299   : > { %v1359_v36 = vadd.f32 %v1914_v3, %v2501_v63 }
 0x29a   : > { %v1350_v9 = vpop.f32.mrf.mxu1 }
 0x29b   : > { %1479 = vst [vmem:[%s2506_s24 + $0x10] sm:$0xff] %v1359_v36  ;;  %v1351_v8 = vadd.f32 %v1350_v9, %v2501_v63 }
 0x29c   : > { %v1915_v10 = vpop.f32.mrf.mxu1 }
 0x29d   : > { %1477 = vst [vmem:[%s2506_s24] sm:$0xff] %v1351_v8  ;;  %v1362_v50 = vadd.f32 %v1915_v10, %v2501_v63 }
 0x29e   : > { %v1353_v28 = vpop.f32.mrf.mxu1 }
 0x29f   : > { %1480 = vst [vmem:[%s2506_s24 + $0x18] sm:$0xff] %v1362_v50  ;;  %v1354_v52 = vadd.f32 %v1353_v28, %v2501_v63 }
 0x2a1   : > { %1478 = vst [vmem:[%s2506_s24 + $0x8] sm:$0xff] %v1354_v52  ;;  %v1918_v45 = vpop.f32.mrf.mxu1 }
 0x2a2   : > { %v1375_v30 = vadd.f32 %v1918_v45, %v2501_v63 }
 0x2a3   : > { %v1366_v11 = vpop.f32.mrf.mxu1 }
 0x2a4   : > { %1483 = vst [vmem:[%s2506_s24 + $0x30] sm:$0xff] %v1375_v30  ;;  %v1367_v13 = vadd.f32 %v1366_v11, %v2501_v63 }
 0x2a5   : > { %v1919_v15 = vpop.f32.mrf.mxu1 }
 0x2a6   : > { %1481 = vst [vmem:[%s2506_s24 + $0x20] sm:$0xff] %v1367_v13  ;;  %v1378_v51 = vadd.f32 %v1919_v15, %v2501_v63 }
 0x2a7   : > { %v1369_v16 = vpop.f32.mrf.mxu1 }
 0x2a8   : > { %1484 = vst [vmem:[%s2506_s24 + $0x38] sm:$0xff] %v1378_v51  ;;  %v1370_v53 = vadd.f32 %v1369_v16, %v2501_v63 }
 0x2a9   : > { %v1922_v17 = vpop.f32.mrf.mxu1 }
 0x2aa   : > { %1482 = vst [vmem:[%s2506_s24 + $0x28] sm:$0xff] %v1370_v53  ;;  %v1391_v32 = vadd.f32 %v1922_v17, %v2501_v63 }
 0x2ab   : > { %v1382_v18 = vpop.f32.mrf.mxu1 }
 0x2ac   : > { %1487 = vst [vmem:[%s2506_s24 + $0x50] sm:$0xff] %v1391_v32  ;;  %v1383_v20 = vadd.f32 %v1382_v18, %v2501_v63 }
 0x2ad   : > { %v1923_v12 = vpop.f32.mrf.mxu1 }
 0x2ae   : > { %1485 = vst [vmem:[%s2506_s24 + $0x40] sm:$0xff] %v1383_v20  ;;  %v1394_v21 = vadd.f32 %v1923_v12, %v2501_v63 }
 0x2af   : > { %v1385_v14 = vpop.f32.mrf.mxu1 }
 0x2b0   : > { %1488 = vst [vmem:[%s2506_s24 + $0x58] sm:$0xff] %v1394_v21  ;;  %v1386_v19 = vadd.f32 %v1385_v14, %v2501_v63 }
 0x2b1   : > { %v1926_v38 = vpop.f32.mrf.mxu1 }
 0x2b2   : > { %1486 = vst [vmem:[%s2506_s24 + $0x48] sm:$0xff] %v1386_v19  ;;  %v1407_v23 = vadd.f32 %v1926_v38, %v2501_v63 }
 0x2b3   : > { %v1398_v24 = vpop.f32.mrf.mxu1 }
 0x2b4   : > { %1491 = vst [vmem:[%s2506_s24 + $0x70] sm:$0xff] %v1407_v23  ;;  %v1399_v54 = vadd.f32 %v1398_v24, %v2501_v63 }
 0x2b5   : > { %v1927_v22 = vpop.f32.mrf.mxu1 }
 0x2b6   : > { %1489 = vst [vmem:[%s2506_s24 + $0x60] sm:$0xff] %v1399_v54  ;;  %v1410_v56 = vadd.f32 %v1927_v22, %v2501_v63 }
 0x2b7   : > { %v1401_v25 = vpop.f32.mrf.mxu1 }
 0x2b8   : > { %1492 = vst [vmem:[%s2506_s24 + $0x78] sm:$0xff] %v1410_v56  ;;  %v1402_v46 = vadd.f32 %v1401_v25, %v2501_v63 }
 0x2b9   : > { %v1930_v26 = vpop.f32.mrf.mxu1 }
 0x2ba   : > { %1490 = vst [vmem:[%s2506_s24 + $0x68] sm:$0xff] %v1402_v46  ;;  %v1423_v47 = vadd.f32 %v1930_v26, %v2501_v63 }
 0x2bb   : > { %v1414_v55 = vpop.f32.mrf.mxu1 }
 0x2bc   : > { %1495 = vst [vmem:[%s2506_s24 + $0x90] sm:$0xff] %v1423_v47  ;;  %v1415_v57 = vadd.f32 %v1414_v55, %v2501_v63 }
 0x2bd   : > { %v1931_v40 = vpop.f32.mrf.mxu1 }
 0x2be   : > { %1493 = vst [vmem:[%s2506_s24 + $0x80] sm:$0xff] %v1415_v57  ;;  %v1426_v48 = vadd.f32 %v1931_v40, %v2501_v63 }
 0x2bf   : > { %v1417_v34 = vpop.f32.mrf.mxu1 }
 0x2c0   : > { %1496 = vst [vmem:[%s2506_s24 + $0x98] sm:$0xff] %v1426_v48  ;;  %v1418_v27 = vadd.f32 %v1417_v34, %v2501_v63 }
 0x2c1   : > { %v1934_v37 = vpop.f32.mrf.mxu1 }
 0x2c2   : > { %1494 = vst [vmem:[%s2506_s24 + $0x88] sm:$0xff] %v1418_v27  ;;  %v1439_v41 = vadd.f32 %v1934_v37, %v2501_v63 }
 0x2c3   : > { %v1430_v43 = vpop.f32.mrf.mxu1 }
 0x2c4   : > { %1499 = vst [vmem:[%s2506_s24 + $0xb0] sm:$0xff] %v1439_v41  ;;  %v1431_v39 = vadd.f32 %v1430_v43, %v2501_v63 }
 0x2c5   : > { %v1935_v2 = vpop.f32.mrf.mxu1 }
 0x2c6   : > { %1497 = vst [vmem:[%s2506_s24 + $0xa0] sm:$0xff] %v1431_v39  ;;  %v1442_v33 = vadd.f32 %v1935_v2, %v2501_v63 }
 0x2c7   : > { %v1433_v42 = vpop.f32.mrf.mxu1 }
 0x2c8   : > { %1500 = vst [vmem:[%s2506_s24 + $0xb8] sm:$0xff] %v1442_v33  ;;  %v1434_v0 = vadd.f32 %v1433_v42, %v2501_v63 }
 0x2c9   : > { %v1938_v58 = vpop.f32.mrf.mxu1 }
 0x2ca   : > { %1498 = vst [vmem:[%s2506_s24 + $0xa8] sm:$0xff] %v1434_v0  ;;  %v1455_v60 = vadd.f32 %v1938_v58, %v2501_v63 }
 0x2cb   : > { %v1446_v49 = vpop.f32.mrf.mxu1 }
 0x2cc   : > { %1503 = vst [vmem:[%s2506_s24 + $0xd0] sm:$0xff] %v1455_v60  ;;  %v1447_v59 = vadd.f32 %v1446_v49, %v2501_v63 }
 0x2cd   : > { %v1939_v61 = vpop.f32.mrf.mxu1 }
 0x2ce   : > { %1501 = vst [vmem:[%s2506_s24 + $0xc0] sm:$0xff] %v1447_v59  ;;  %v1458_v29 = vadd.f32 %v1939_v61, %v2501_v63 }
 0x2cf   : > { %v1449_v44 = vpop.f32.mrf.mxu1 }
 0x2d0   : > { %1504 = vst [vmem:[%s2506_s24 + $0xd8] sm:$0xff] %v1458_v29  ;;  %v1450_v4 = vadd.f32 %v1449_v44, %v2501_v63 }
 0x2d1   : > { %v1942_v5 = vpop.f32.mrf.mxu1 }
 0x2d2   : > { %1502 = vst [vmem:[%s2506_s24 + $0xc8] sm:$0xff] %v1450_v4  ;;  %v1471_v31 = vadd.f32 %v1942_v5, %v2501_v63 }
 0x2d3   : > { %v1462_v6 = vpop.f32.mrf.mxu1 }
 0x2d4   : > { %1507 = vst [vmem:[%s2506_s24 + $0xf0] sm:$0xff] %v1471_v31  ;;  %v1463_v7 = vadd.f32 %v1462_v6, %v2501_v63 }
 0x2d5   : > { %v1943_v62 = vpop.f32.mrf.mxu1 }
 0x2d6   : > { %1505 = vst [vmem:[%s2506_s24 + $0xe0] sm:$0xff] %v1463_v7  ;;  %v1474_v1 = vadd.f32 %v1943_v62, %v2501_v63 }
 0x2d7   : > { %v1465_v35 = vpop.f32.mrf.mxu1 }
 0x2d8   : > { %1508 = vst [vmem:[%s2506_s24 + $0xf8] sm:$0xff] %v1474_v1  ;;  %v1466_v3 = vadd.f32 %v1465_v35, %v2501_v63 }
 0x2da   : > { %1506 = vst [vmem:[%s2506_s24 + $0xe8] sm:$0xff] %v1466_v3 }
 0x2db PF: > { %s13_s12 = sadd.s32 1, %s2127_s12  }
 0x2dc   : > { %p10_p4 = scmp.ge.s32.totalorder %s13_s12, 4  }
 0x2de   :  { %12 = sbr.rel (!%p10_p4) target bundleno = 1 (0x1), region = 62 }

</bundles_post_ra>
